<compile_context>
chip_gen: v5e
topology: v5e:2x2
jax: 0.10.0
libtpu: 0.0.40
codegen_flags: <defaults>
</compile_context>

<pallas_src>
import functools

import jax
import jax.numpy as jnp
from jax.experimental import pallas as pl
from jax.experimental.pallas import tpu as pltpu


_PARAM_ORDER = ("perm", "wi_g", "wh_g", "bi_g", "bhn", "w_att_big", "u_big",
                "e_mat", "s_mat", "w_caps", "b_caps", "g_mat", "gt_mat")


# ---------------------------------------------------------------------------
# Fused kernel: GRU recurrence + attention pooling + capsule squash
# ---------------------------------------------------------------------------
def _reinforced_gru_kernel(x_ref, perm_ref, wi_ref, wh_ref, bi_ref, bhn_ref,
                           watt_ref, ubig_ref, emat_ref, smat_ref,
                           wcaps_ref, bcaps_ref, g_ref, gt_ref,
                           out_ref, caps_in_ref, *, T, B, H, HP):
    f32 = jnp.float32
    bf16 = jnp.bfloat16

    # ---- batch-major -> time-major reorder via an exact permutation matmul --
    x_bf = x_ref[...].astype(bf16)                                   # (B*T, E)
    xt = jnp.dot(perm_ref[...], x_bf,
                 preferred_element_type=f32).astype(bf16)            # (T*B, E)

    # ---- hoisted fused input-gate matmul: (T*B, E) @ (E, 3*HP) --------------
    # bi_ref already contains b_ih (+ b_hh for r/z); gates at lanes 0/HP/2*HP.
    gi_all = (jnp.dot(xt, wi_ref[...], preferred_element_type=f32)
              + bi_ref[...])                                         # (T*B, 3*HP)

    wh = wh_ref[...]                                                 # (HP, 3*HP) bf16
    bhn_b = jnp.broadcast_to(bhn_ref[...], (B, HP))                  # hoisted once

    # ---- GRU recurrence, fully unrolled (torch gate order r, z, n) ----------
    h = jnp.zeros((B, HP), f32)
    for t in range(T):
        gi = gi_all[t * B:(t + 1) * B, :]                            # aligned rows
        gh = jnp.dot(h.astype(bf16), wh, preferred_element_type=f32)
        r = jax.nn.sigmoid(gi[:, 0:HP] + gh[:, 0:HP])                # vreg-aligned
        z = jax.nn.sigmoid(gi[:, HP:2 * HP] + gh[:, HP:2 * HP])
        n = jnp.tanh(gi[:, 2 * HP:3 * HP] + r * (gh[:, 2 * HP:3 * HP] + bhn_b))
        h = (1.0 - z) * n + z * h
        # Off the h-dependency chain: stash the H real lanes, time-major per row.
        caps_in_ref[:, t * H:(t + 1) * H] = h[:, 0:H]

    caps_in = caps_in_ref[...]                                       # (B, T*H) f32
    caps_bf = caps_in.astype(bf16)

    # ---- attention pooling (batched, block-diagonal matmul form) ------------
    a = jnp.tanh(jnp.dot(caps_bf, watt_ref[...],
                         preferred_element_type=f32))                # (B, T*ATT)
    scores = jnp.dot(a.astype(bf16), ubig_ref[...],
                     preferred_element_type=f32)                     # (B, T)
    m = jnp.max(scores, axis=-1, keepdims=True)
    e = jnp.exp(scores - m)
    w = e / jnp.sum(e, axis=-1, keepdims=True)                       # exact softmax
    w_exp = jnp.dot(w.astype(bf16), emat_ref[...],
                    preferred_element_type=f32)                      # (B, T*H)
    attn = jnp.dot((caps_in * w_exp).astype(bf16), smat_ref[...],
                   preferred_element_type=f32)                       # (B, H)

    # ---- capsule projection + squash ----------------------------------------
    u = jnp.dot(caps_bf, wcaps_ref[...],
                preferred_element_type=f32) + bcaps_ref[...]         # (B, NC*CD)
    sq = jnp.dot((u * u).astype(bf16), g_ref[...],
                 preferred_element_type=f32)                         # (B, NC)
    scale = sq / ((1.0 + sq) * jnp.sqrt(sq + 1e-8))
    caps = u * jnp.dot(scale.astype(bf16), gt_ref[...],
                       preferred_element_type=f32)                   # (B, NC*CD)

    # ---- single fused output block (no wrapper concat) ----------------------
    out_ref[:, 0:H] = attn
    out_ref[:, H:] = caps


# ---------------------------------------------------------------------------
# Wrapper
# ---------------------------------------------------------------------------
def reinforced_gru_forward(x_bte, params):
    """x_bte: (B, T, E) batch-first -> (B, H + num_caps*cap_dim)."""
    B, T, E = x_bte.shape
    H = params["s_mat"].shape[1]
    HP = params["bhn"].shape[1]
    NCD = params["w_caps"].shape[1]
    NC = params["g_mat"].shape[1]
    ATT = params["w_att_big"].shape[1] // T

    # Free collapsing reshape (no transpose launch); reorder happens in-kernel.
    x_bm = x_bte.reshape(B * T, E)

    kernel = functools.partial(_reinforced_gru_kernel, T=T, B=B, H=H, HP=HP)
    args = (x_bm,) + tuple(params[k] for k in _PARAM_ORDER)

    flops = 2 * ((T * B) * (B * T) * E            # permutation reorder
                 + (T * B) * E * (3 * HP)         # input gates (hoisted)
                 + T * B * HP * (3 * HP)          # recurrence
                 + B * (T * H) * (T * ATT)        # attention projection
                 + B * (T * ATT) * T              # attention scores
                 + B * T * (T * H)                # attention weight expand
                 + B * (T * H) * H                # attention weighted sum
                 + B * (T * H) * NCD              # capsule projection
                 + 2 * B * NCD * NC)              # squash norms / broadcast
    transcendentals = T * B * 3 * HP + B * T * ATT + B * T + B * NC
    bytes_accessed = (sum(int(a.size) * a.dtype.itemsize for a in args)
                      + B * (H + NCD) * 4)

    return pl.pallas_call(
        kernel,
        out_shape=jax.ShapeDtypeStruct((B, H + NCD), jnp.float32),
        scratch_shapes=[pltpu.VMEM((B, T * H), jnp.float32)],
        cost_estimate=pl.CostEstimate(flops=int(flops),
                                      transcendentals=int(transcendentals),
                                      bytes_accessed=int(bytes_accessed)),
    )(*args)


# ---------------------------------------------------------------------------
# Deterministic parameter construction (single layer, unidirectional)
# ---------------------------------------------------------------------------
def make_params(key, embed_dim, hidden, attention_size, seq_len, batch,
                num_caps, cap_dim):
    E, H, A, T, B = embed_dim, hidden, attention_size, seq_len, batch
    HP = 128                               # lane-padded gate / hidden width
    NCD = num_caps * cap_dim
    f32, bf16 = jnp.float32, jnp.bfloat16
    ks = jax.random.split(key, 8)

    # raw parameters (column gate order [r | z | n], as in torch.nn.GRU)
    wi = 0.1 * jax.random.normal(ks[0], (E, 3 * H), f32)
    wh = 0.1 * jax.random.normal(ks[1], (H, 3 * H), f32)
    bi = 0.1 * jax.random.normal(ks[2], (3 * H,), f32)
    bh = 0.1 * jax.random.normal(ks[3], (3 * H,), f32)
    w_omega = 0.1 * jax.random.normal(ks[4], (H, A), f32)
    u_omega = 0.1 * jax.random.normal(ks[5], (A,), f32)
    w_caps = 0.05 * jax.random.normal(ks[6], (T * H, NCD), f32)
    b_caps = 0.05 * jax.random.normal(ks[7], (NCD,), f32)

    def pad_gate_cols(wmat):
        """(rows, 3H) -> (rows, 3*HP): gate g at lane offset g*HP, zero-filled."""
        out = jnp.zeros((wmat.shape[0], 3 * HP), f32)
        for g in range(3):
            out = out.at[:, g * HP:g * HP + H].set(wmat[:, g * H:(g + 1) * H])
        return out

    wi_g = pad_gate_cols(wi)                                         # (E, 3*HP)
    wh_g = jnp.zeros((HP, 3 * HP), f32).at[:H, :].set(pad_gate_cols(wh))
    # fold b_hh into b_ih for r/z (outside the r* product); keep b_hn separate.
    bias_fold = jnp.concatenate(
        [bi[0:H] + bh[0:H], bi[H:2 * H] + bh[H:2 * H], bi[2 * H:3 * H]])
    bi_g = pad_gate_cols(bias_fold[None, :])                         # (1, 3*HP)
    bhn = jnp.zeros((1, HP), f32).at[:, :H].set(bh[None, 2 * H:3 * H])

    # attention as block matmuls over the (B, T*H) time-major flattening
    w_att_big = jnp.zeros((T * H, T * A), f32)
    u_big = jnp.zeros((T * A, T), f32)
    e_mat = jnp.zeros((T, T * H), f32)
    s_mat = jnp.zeros((T * H, H), f32)
    eye_h = jnp.eye(H, dtype=f32)
    for t in range(T):
        w_att_big = w_att_big.at[t * H:(t + 1) * H, t * A:(t + 1) * A].set(w_omega)
        u_big = u_big.at[t * A:(t + 1) * A, t].set(u_omega)
        e_mat = e_mat.at[t, t * H:(t + 1) * H].set(1.0)
        s_mat = s_mat.at[t * H:(t + 1) * H, :].set(eye_h)

    # exact 0/1 permutation: time-major row t*B+b <- batch-major row b*T+t
    tt, bb = jnp.meshgrid(jnp.arange(T), jnp.arange(B), indexing="ij")
    perm = jnp.zeros((T * B, B * T), f32).at[
        (tt * B + bb).ravel(), (bb * T + tt).ravel()].set(1.0)

    # capsule-group indicators for per-capsule squared norms / squash broadcast
    group = jnp.repeat(jnp.eye(num_caps, dtype=f32), cap_dim, axis=0)  # (NCD, NC)

    return {
        "perm": perm.astype(bf16),
        "wi_g": wi_g.astype(bf16),
        "wh_g": wh_g.astype(bf16),
        "bi_g": bi_g,                        # f32
        "bhn": bhn,                          # f32
        "w_att_big": w_att_big.astype(bf16),
        "u_big": u_big.astype(bf16),
        "e_mat": e_mat.astype(bf16),
        "s_mat": s_mat.astype(bf16),
        "w_caps": w_caps.astype(bf16),
        "b_caps": b_caps[None, :],           # (1, NCD) f32
        "g_mat": group.astype(bf16),
        "gt_mat": group.T.astype(bf16),
    }


if __name__ == "__main__":
    # Shapes consistent with the module: word_embedding_dimension=32,
    # hidden_size=32, bi_flag=False, num_layer=1, attention_size=16, seq=8,
    # batch=8  -> flattened GRU output = 8*32 = 256, matching CapsNet(256, 23*16).
    B, T, E, H = 8, 8, 32, 32
    ATT, NUM_CAPS, CAP_DIM = 16, 23, 16

    key = jax.random.PRNGKey(0)
    kx, kp = jax.random.split(key)
    x = jax.random.normal(kx, (B, T, E), jnp.float32)
    params = make_params(kp, E, H, ATT, T, B, NUM_CAPS, CAP_DIM)

    out = jax.jit(lambda a: reinforced_gru_forward(a, params))(x)
    out = jax.block_until_ready(out)

    assert out.shape == (B, H + NUM_CAPS * CAP_DIM), out.shape
    assert bool(jnp.all(jnp.isfinite(out)))
    print("KERNEL_OK")
</pallas_src>

<mosaic_0001>
module attributes {stable_mosaic.version = 11 : i64} {
  func.func @_reinforced_gru_kernel(%arg0: memref<64x32xf32, #tpu.memory_space<vmem>>, %arg1: memref<64x64xbf16, #tpu.memory_space<vmem>>, %arg2: memref<32x384xbf16, #tpu.memory_space<vmem>>, %arg3: memref<128x384xbf16, #tpu.memory_space<vmem>>, %arg4: memref<1x384xf32, #tpu.memory_space<vmem>>, %arg5: memref<1x128xf32, #tpu.memory_space<vmem>>, %arg6: memref<256x128xbf16, #tpu.memory_space<vmem>>, %arg7: memref<128x8xbf16, #tpu.memory_space<vmem>>, %arg8: memref<8x256xbf16, #tpu.memory_space<vmem>>, %arg9: memref<256x32xbf16, #tpu.memory_space<vmem>>, %arg10: memref<256x368xbf16, #tpu.memory_space<vmem>>, %arg11: memref<1x368xf32, #tpu.memory_space<vmem>>, %arg12: memref<368x23xbf16, #tpu.memory_space<vmem>>, %arg13: memref<23x368xbf16, #tpu.memory_space<vmem>>, %arg14: memref<8x400xf32, #tpu.memory_space<vmem>>, %arg15: memref<8x256xf32, #tpu.memory_space<vmem>>) attributes {dimension_semantics = [], scalar_prefetch = 0 : i64, scratch_operands = 1 : i64, tpu.core_type = #tpu.core_type<tc>} {
    %c0 = arith.constant 0 : index
    %c0_0 = arith.constant 0 : index
    %0 = vector.load %arg0[%c0, %c0_0] : memref<64x32xf32, #tpu.memory_space<vmem>>, vector<64x32xf32>
    %1 = arith.truncf %0 : vector<64x32xf32> to vector<64x32xbf16>
    %c0_1 = arith.constant 0 : index
    %c0_2 = arith.constant 0 : index
    %2 = vector.load %arg1[%c0_1, %c0_2] : memref<64x64xbf16, #tpu.memory_space<vmem>>, vector<64x64xbf16>
    %cst = arith.constant dense<0.000000e+00> : vector<64x32xf32>
    %3 = tpu.matmul %2, %1, %cst {dimension_numbers = #tpu.dot_dimension_numbers<[1], [0], [0], [1], [0, 0, 1, 1], [], []>} : vector<64x64xbf16>, vector<64x32xbf16>, vector<64x32xf32> -> vector<64x32xf32>
    %4 = arith.truncf %3 : vector<64x32xf32> to vector<64x32xbf16>
    %c0_3 = arith.constant 0 : index
    %c0_4 = arith.constant 0 : index
    %5 = vector.load %arg2[%c0_3, %c0_4] : memref<32x384xbf16, #tpu.memory_space<vmem>>, vector<32x384xbf16>
    %cst_5 = arith.constant dense<0.000000e+00> : vector<64x384xf32>
    %6 = tpu.matmul %4, %5, %cst_5 {dimension_numbers = #tpu.dot_dimension_numbers<[1], [0], [0], [1], [0, 0, 1, 1], [], []>} : vector<64x32xbf16>, vector<32x384xbf16>, vector<64x384xf32> -> vector<64x384xf32>
    %c0_6 = arith.constant 0 : index
    %c0_7 = arith.constant 0 : index
    %7 = vector.load %arg4[%c0_6, %c0_7] : memref<1x384xf32, #tpu.memory_space<vmem>>, vector<1x384xf32>
    %8 = vector.broadcast %7 : vector<1x384xf32> to vector<64x384xf32>
    %9 = arith.addf %6, %8 : vector<64x384xf32>
    %c0_8 = arith.constant 0 : index
    %c0_9 = arith.constant 0 : index
    %10 = vector.load %arg3[%c0_8, %c0_9] : memref<128x384xbf16, #tpu.memory_space<vmem>>, vector<128x384xbf16>
    %c0_10 = arith.constant 0 : index
    %c0_11 = arith.constant 0 : index
    %11 = vector.load %arg5[%c0_10, %c0_11] : memref<1x128xf32, #tpu.memory_space<vmem>>, vector<1x128xf32>
    %12 = vector.shape_cast %11 : vector<1x128xf32> to vector<1x128xf32>
    %13 = vector.broadcast %12 : vector<1x128xf32> to vector<8x128xf32>
    %cst_12 = arith.constant 0.000000e+00 : f32
    %14 = vector.broadcast %cst_12 : f32 to vector<8x128xf32>
    %15 = vector.extract_strided_slice %9 {offsets = [0, 0], sizes = [8, 384], strides = [1, 1]} : vector<64x384xf32> to vector<8x384xf32>
    %16 = arith.truncf %14 : vector<8x128xf32> to vector<8x128xbf16>
    %cst_13 = arith.constant dense<0.000000e+00> : vector<8x384xf32>
    %17 = tpu.matmul %16, %10, %cst_13 {dimension_numbers = #tpu.dot_dimension_numbers<[1], [0], [0], [1], [0, 0, 1, 1], [], []>} : vector<8x128xbf16>, vector<128x384xbf16>, vector<8x384xf32> -> vector<8x384xf32>
    %18 = vector.extract_strided_slice %15 {offsets = [0, 0], sizes = [8, 128], strides = [1, 1]} : vector<8x384xf32> to vector<8x128xf32>
    %19 = vector.extract_strided_slice %17 {offsets = [0, 0], sizes = [8, 128], strides = [1, 1]} : vector<8x384xf32> to vector<8x128xf32>
    %20 = arith.addf %18, %19 : vector<8x128xf32>
    %21 = arith.negf %20 : vector<8x128xf32>
    %22 = math.exp %21 : vector<8x128xf32>
    %cst_14 = arith.constant 1.000000e+00 : f32
    %23 = vector.broadcast %cst_14 : f32 to vector<8x128xf32>
    %24 = arith.addf %23, %22 : vector<8x128xf32>
    %25 = arith.divf %23, %24 : vector<8x128xf32>
    %26 = vector.extract_strided_slice %15 {offsets = [0, 128], sizes = [8, 128], strides = [1, 1]} : vector<8x384xf32> to vector<8x128xf32>
    %27 = vector.extract_strided_slice %17 {offsets = [0, 128], sizes = [8, 128], strides = [1, 1]} : vector<8x384xf32> to vector<8x128xf32>
    %28 = arith.addf %26, %27 : vector<8x128xf32>
    %29 = arith.negf %28 : vector<8x128xf32>
    %30 = math.exp %29 : vector<8x128xf32>
    %cst_15 = arith.constant 1.000000e+00 : f32
    %31 = vector.broadcast %cst_15 : f32 to vector<8x128xf32>
    %32 = arith.addf %31, %30 : vector<8x128xf32>
    %33 = arith.divf %31, %32 : vector<8x128xf32>
    %34 = vector.extract_strided_slice %15 {offsets = [0, 256], sizes = [8, 128], strides = [1, 1]} : vector<8x384xf32> to vector<8x128xf32>
    %35 = vector.extract_strided_slice %17 {offsets = [0, 256], sizes = [8, 128], strides = [1, 1]} : vector<8x384xf32> to vector<8x128xf32>
    %36 = arith.addf %35, %13 : vector<8x128xf32>
    %37 = arith.mulf %25, %36 : vector<8x128xf32>
    %38 = arith.addf %34, %37 : vector<8x128xf32>
    %39 = math.tanh %38 : vector<8x128xf32>
    %cst_16 = arith.constant 1.000000e+00 : f32
    %40 = vector.broadcast %cst_16 : f32 to vector<8x128xf32>
    %41 = arith.subf %40, %33 : vector<8x128xf32>
    %42 = arith.mulf %41, %39 : vector<8x128xf32>
    %43 = arith.mulf %33, %14 : vector<8x128xf32>
    %44 = arith.addf %42, %43 : vector<8x128xf32>
    %45 = vector.extract_strided_slice %44 {offsets = [0, 0], sizes = [8, 32], strides = [1, 1]} : vector<8x128xf32> to vector<8x32xf32>
    %c0_17 = arith.constant 0 : index
    %c0_18 = arith.constant 0 : index
    %46 = vector.load %arg15[%c0_17, %c0_18] : memref<8x256xf32, #tpu.memory_space<vmem>>, vector<8x32xf32>
    tpu.vector_store %arg15[%c0_17, %c0_18], %45 {strides = array<i32>} : memref<8x256xf32, #tpu.memory_space<vmem>>, vector<8x32xf32>,
    %47 = vector.extract_strided_slice %9 {offsets = [8, 0], sizes = [8, 384], strides = [1, 1]} : vector<64x384xf32> to vector<8x384xf32>
    %48 = arith.truncf %44 : vector<8x128xf32> to vector<8x128xbf16>
    %cst_19 = arith.constant dense<0.000000e+00> : vector<8x384xf32>
    %49 = tpu.matmul %48, %10, %cst_19 {dimension_numbers = #tpu.dot_dimension_numbers<[1], [0], [0], [1], [0, 0, 1, 1], [], []>} : vector<8x128xbf16>, vector<128x384xbf16>, vector<8x384xf32> -> vector<8x384xf32>
    %50 = vector.extract_strided_slice %47 {offsets = [0, 0], sizes = [8, 128], strides = [1, 1]} : vector<8x384xf32> to vector<8x128xf32>
    %51 = vector.extract_strided_slice %49 {offsets = [0, 0], sizes = [8, 128], strides = [1, 1]} : vector<8x384xf32> to vector<8x128xf32>
    %52 = arith.addf %50, %51 : vector<8x128xf32>
    %53 = arith.negf %52 : vector<8x128xf32>
    %54 = math.exp %53 : vector<8x128xf32>
    %cst_20 = arith.constant 1.000000e+00 : f32
    %55 = vector.broadcast %cst_20 : f32 to vector<8x128xf32>
    %56 = arith.addf %55, %54 : vector<8x128xf32>
    %57 = arith.divf %55, %56 : vector<8x128xf32>
    %58 = vector.extract_strided_slice %47 {offsets = [0, 128], sizes = [8, 128], strides = [1, 1]} : vector<8x384xf32> to vector<8x128xf32>
    %59 = vector.extract_strided_slice %49 {offsets = [0, 128], sizes = [8, 128], strides = [1, 1]} : vector<8x384xf32> to vector<8x128xf32>
    %60 = arith.addf %58, %59 : vector<8x128xf32>
    %61 = arith.negf %60 : vector<8x128xf32>
    %62 = math.exp %61 : vector<8x128xf32>
    %cst_21 = arith.constant 1.000000e+00 : f32
    %63 = vector.broadcast %cst_21 : f32 to vector<8x128xf32>
    %64 = arith.addf %63, %62 : vector<8x128xf32>
    %65 = arith.divf %63, %64 : vector<8x128xf32>
    %66 = vector.extract_strided_slice %47 {offsets = [0, 256], sizes = [8, 128], strides = [1, 1]} : vector<8x384xf32> to vector<8x128xf32>
    %67 = vector.extract_strided_slice %49 {offsets = [0, 256], sizes = [8, 128], strides = [1, 1]} : vector<8x384xf32> to vector<8x128xf32>
    %68 = arith.addf %67, %13 : vector<8x128xf32>
    %69 = arith.mulf %57, %68 : vector<8x128xf32>
    %70 = arith.addf %66, %69 : vector<8x128xf32>
    %71 = math.tanh %70 : vector<8x128xf32>
    %cst_22 = arith.constant 1.000000e+00 : f32
    %72 = vector.broadcast %cst_22 : f32 to vector<8x128xf32>
    %73 = arith.subf %72, %65 : vector<8x128xf32>
    %74 = arith.mulf %73, %71 : vector<8x128xf32>
    %75 = arith.mulf %65, %44 : vector<8x128xf32>
    %76 = arith.addf %74, %75 : vector<8x128xf32>
    %77 = vector.extract_strided_slice %76 {offsets = [0, 0], sizes = [8, 32], strides = [1, 1]} : vector<8x128xf32> to vector<8x32xf32>
    %c0_23 = arith.constant 0 : index
    %c32 = arith.constant 32 : index
    %78 = vector.load %arg15[%c0_23, %c32] : memref<8x256xf32, #tpu.memory_space<vmem>>, vector<8x32xf32>
    tpu.vector_store %arg15[%c0_23, %c32], %77 {strides = array<i32>} : memref<8x256xf32, #tpu.memory_space<vmem>>, vector<8x32xf32>,
    %79 = vector.extract_strided_slice %9 {offsets = [16, 0], sizes = [8, 384], strides = [1, 1]} : vector<64x384xf32> to vector<8x384xf32>
    %80 = arith.truncf %76 : vector<8x128xf32> to vector<8x128xbf16>
    %cst_24 = arith.constant dense<0.000000e+00> : vector<8x384xf32>
    %81 = tpu.matmul %80, %10, %cst_24 {dimension_numbers = #tpu.dot_dimension_numbers<[1], [0], [0], [1], [0, 0, 1, 1], [], []>} : vector<8x128xbf16>, vector<128x384xbf16>, vector<8x384xf32> -> vector<8x384xf32>
    %82 = vector.extract_strided_slice %79 {offsets = [0, 0], sizes = [8, 128], strides = [1, 1]} : vector<8x384xf32> to vector<8x128xf32>
    %83 = vector.extract_strided_slice %81 {offsets = [0, 0], sizes = [8, 128], strides = [1, 1]} : vector<8x384xf32> to vector<8x128xf32>
    %84 = arith.addf %82, %83 : vector<8x128xf32>
    %85 = arith.negf %84 : vector<8x128xf32>
    %86 = math.exp %85 : vector<8x128xf32>
    %cst_25 = arith.constant 1.000000e+00 : f32
    %87 = vector.broadcast %cst_25 : f32 to vector<8x128xf32>
    %88 = arith.addf %87, %86 : vector<8x128xf32>
    %89 = arith.divf %87, %88 : vector<8x128xf32>
    %90 = vector.extract_strided_slice %79 {offsets = [0, 128], sizes = [8, 128], strides = [1, 1]} : vector<8x384xf32> to vector<8x128xf32>
    %91 = vector.extract_strided_slice %81 {offsets = [0, 128], sizes = [8, 128], strides = [1, 1]} : vector<8x384xf32> to vector<8x128xf32>
    %92 = arith.addf %90, %91 : vector<8x128xf32>
    %93 = arith.negf %92 : vector<8x128xf32>
    %94 = math.exp %93 : vector<8x128xf32>
    %cst_26 = arith.constant 1.000000e+00 : f32
    %95 = vector.broadcast %cst_26 : f32 to vector<8x128xf32>
    %96 = arith.addf %95, %94 : vector<8x128xf32>
    %97 = arith.divf %95, %96 : vector<8x128xf32>
    %98 = vector.extract_strided_slice %79 {offsets = [0, 256], sizes = [8, 128], strides = [1, 1]} : vector<8x384xf32> to vector<8x128xf32>
    %99 = vector.extract_strided_slice %81 {offsets = [0, 256], sizes = [8, 128], strides = [1, 1]} : vector<8x384xf32> to vector<8x128xf32>
    %100 = arith.addf %99, %13 : vector<8x128xf32>
    %101 = arith.mulf %89, %100 : vector<8x128xf32>
    %102 = arith.addf %98, %101 : vector<8x128xf32>
    %103 = math.tanh %102 : vector<8x128xf32>
    %cst_27 = arith.constant 1.000000e+00 : f32
    %104 = vector.broadcast %cst_27 : f32 to vector<8x128xf32>
    %105 = arith.subf %104, %97 : vector<8x128xf32>
    %106 = arith.mulf %105, %103 : vector<8x128xf32>
    %107 = arith.mulf %97, %76 : vector<8x128xf32>
    %108 = arith.addf %106, %107 : vector<8x128xf32>
    %109 = vector.extract_strided_slice %108 {offsets = [0, 0], sizes = [8, 32], strides = [1, 1]} : vector<8x128xf32> to vector<8x32xf32>
    %c0_28 = arith.constant 0 : index
    %c64 = arith.constant 64 : index
    %110 = vector.load %arg15[%c0_28, %c64] : memref<8x256xf32, #tpu.memory_space<vmem>>, vector<8x32xf32>
    tpu.vector_store %arg15[%c0_28, %c64], %109 {strides = array<i32>} : memref<8x256xf32, #tpu.memory_space<vmem>>, vector<8x32xf32>,
    %111 = vector.extract_strided_slice %9 {offsets = [24, 0], sizes = [8, 384], strides = [1, 1]} : vector<64x384xf32> to vector<8x384xf32>
    %112 = arith.truncf %108 : vector<8x128xf32> to vector<8x128xbf16>
    %cst_29 = arith.constant dense<0.000000e+00> : vector<8x384xf32>
    %113 = tpu.matmul %112, %10, %cst_29 {dimension_numbers = #tpu.dot_dimension_numbers<[1], [0], [0], [1], [0, 0, 1, 1], [], []>} : vector<8x128xbf16>, vector<128x384xbf16>, vector<8x384xf32> -> vector<8x384xf32>
    %114 = vector.extract_strided_slice %111 {offsets = [0, 0], sizes = [8, 128], strides = [1, 1]} : vector<8x384xf32> to vector<8x128xf32>
    %115 = vector.extract_strided_slice %113 {offsets = [0, 0], sizes = [8, 128], strides = [1, 1]} : vector<8x384xf32> to vector<8x128xf32>
    %116 = arith.addf %114, %115 : vector<8x128xf32>
    %117 = arith.negf %116 : vector<8x128xf32>
    %118 = math.exp %117 : vector<8x128xf32>
    %cst_30 = arith.constant 1.000000e+00 : f32
    %119 = vector.broadcast %cst_30 : f32 to vector<8x128xf32>
    %120 = arith.addf %119, %118 : vector<8x128xf32>
    %121 = arith.divf %119, %120 : vector<8x128xf32>
    %122 = vector.extract_strided_slice %111 {offsets = [0, 128], sizes = [8, 128], strides = [1, 1]} : vector<8x384xf32> to vector<8x128xf32>
    %123 = vector.extract_strided_slice %113 {offsets = [0, 128], sizes = [8, 128], strides = [1, 1]} : vector<8x384xf32> to vector<8x128xf32>
    %124 = arith.addf %122, %123 : vector<8x128xf32>
    %125 = arith.negf %124 : vector<8x128xf32>
    %126 = math.exp %125 : vector<8x128xf32>
    %cst_31 = arith.constant 1.000000e+00 : f32
    %127 = vector.broadcast %cst_31 : f32 to vector<8x128xf32>
    %128 = arith.addf %127, %126 : vector<8x128xf32>
    %129 = arith.divf %127, %128 : vector<8x128xf32>
    %130 = vector.extract_strided_slice %111 {offsets = [0, 256], sizes = [8, 128], strides = [1, 1]} : vector<8x384xf32> to vector<8x128xf32>
    %131 = vector.extract_strided_slice %113 {offsets = [0, 256], sizes = [8, 128], strides = [1, 1]} : vector<8x384xf32> to vector<8x128xf32>
    %132 = arith.addf %131, %13 : vector<8x128xf32>
    %133 = arith.mulf %121, %132 : vector<8x128xf32>
    %134 = arith.addf %130, %133 : vector<8x128xf32>
    %135 = math.tanh %134 : vector<8x128xf32>
    %cst_32 = arith.constant 1.000000e+00 : f32
    %136 = vector.broadcast %cst_32 : f32 to vector<8x128xf32>
    %137 = arith.subf %136, %129 : vector<8x128xf32>
    %138 = arith.mulf %137, %135 : vector<8x128xf32>
    %139 = arith.mulf %129, %108 : vector<8x128xf32>
    %140 = arith.addf %138, %139 : vector<8x128xf32>
    %141 = vector.extract_strided_slice %140 {offsets = [0, 0], sizes = [8, 32], strides = [1, 1]} : vector<8x128xf32> to vector<8x32xf32>
    %c0_33 = arith.constant 0 : index
    %c96 = arith.constant 96 : index
    %142 = vector.load %arg15[%c0_33, %c96] : memref<8x256xf32, #tpu.memory_space<vmem>>, vector<8x32xf32>
    tpu.vector_store %arg15[%c0_33, %c96], %141 {strides = array<i32>} : memref<8x256xf32, #tpu.memory_space<vmem>>, vector<8x32xf32>,
    %143 = vector.extract_strided_slice %9 {offsets = [32, 0], sizes = [8, 384], strides = [1, 1]} : vector<64x384xf32> to vector<8x384xf32>
    %144 = arith.truncf %140 : vector<8x128xf32> to vector<8x128xbf16>
    %cst_34 = arith.constant dense<0.000000e+00> : vector<8x384xf32>
    %145 = tpu.matmul %144, %10, %cst_34 {dimension_numbers = #tpu.dot_dimension_numbers<[1], [0], [0], [1], [0, 0, 1, 1], [], []>} : vector<8x128xbf16>, vector<128x384xbf16>, vector<8x384xf32> -> vector<8x384xf32>
    %146 = vector.extract_strided_slice %143 {offsets = [0, 0], sizes = [8, 128], strides = [1, 1]} : vector<8x384xf32> to vector<8x128xf32>
    %147 = vector.extract_strided_slice %145 {offsets = [0, 0], sizes = [8, 128], strides = [1, 1]} : vector<8x384xf32> to vector<8x128xf32>
    %148 = arith.addf %146, %147 : vector<8x128xf32>
    %149 = arith.negf %148 : vector<8x128xf32>
    %150 = math.exp %149 : vector<8x128xf32>
    %cst_35 = arith.constant 1.000000e+00 : f32
    %151 = vector.broadcast %cst_35 : f32 to vector<8x128xf32>
    %152 = arith.addf %151, %150 : vector<8x128xf32>
    %153 = arith.divf %151, %152 : vector<8x128xf32>
    %154 = vector.extract_strided_slice %143 {offsets = [0, 128], sizes = [8, 128], strides = [1, 1]} : vector<8x384xf32> to vector<8x128xf32>
    %155 = vector.extract_strided_slice %145 {offsets = [0, 128], sizes = [8, 128], strides = [1, 1]} : vector<8x384xf32> to vector<8x128xf32>
    %156 = arith.addf %154, %155 : vector<8x128xf32>
    %157 = arith.negf %156 : vector<8x128xf32>
    %158 = math.exp %157 : vector<8x128xf32>
    %cst_36 = arith.constant 1.000000e+00 : f32
    %159 = vector.broadcast %cst_36 : f32 to vector<8x128xf32>
    %160 = arith.addf %159, %158 : vector<8x128xf32>
    %161 = arith.divf %159, %160 : vector<8x128xf32>
    %162 = vector.extract_strided_slice %143 {offsets = [0, 256], sizes = [8, 128], strides = [1, 1]} : vector<8x384xf32> to vector<8x128xf32>
    %163 = vector.extract_strided_slice %145 {offsets = [0, 256], sizes = [8, 128], strides = [1, 1]} : vector<8x384xf32> to vector<8x128xf32>
    %164 = arith.addf %163, %13 : vector<8x128xf32>
    %165 = arith.mulf %153, %164 : vector<8x128xf32>
    %166 = arith.addf %162, %165 : vector<8x128xf32>
    %167 = math.tanh %166 : vector<8x128xf32>
    %cst_37 = arith.constant 1.000000e+00 : f32
    %168 = vector.broadcast %cst_37 : f32 to vector<8x128xf32>
    %169 = arith.subf %168, %161 : vector<8x128xf32>
    %170 = arith.mulf %169, %167 : vector<8x128xf32>
    %171 = arith.mulf %161, %140 : vector<8x128xf32>
    %172 = arith.addf %170, %171 : vector<8x128xf32>
    %173 = vector.extract_strided_slice %172 {offsets = [0, 0], sizes = [8, 32], strides = [1, 1]} : vector<8x128xf32> to vector<8x32xf32>
    %c0_38 = arith.constant 0 : index
    %c128 = arith.constant 128 : index
    %174 = vector.load %arg15[%c0_38, %c128] : memref<8x256xf32, #tpu.memory_space<vmem>>, vector<8x32xf32>
    tpu.vector_store %arg15[%c0_38, %c128], %173 {strides = array<i32>} : memref<8x256xf32, #tpu.memory_space<vmem>>, vector<8x32xf32>,
    %175 = vector.extract_strided_slice %9 {offsets = [40, 0], sizes = [8, 384], strides = [1, 1]} : vector<64x384xf32> to vector<8x384xf32>
    %176 = arith.truncf %172 : vector<8x128xf32> to vector<8x128xbf16>
    %cst_39 = arith.constant dense<0.000000e+00> : vector<8x384xf32>
    %177 = tpu.matmul %176, %10, %cst_39 {dimension_numbers = #tpu.dot_dimension_numbers<[1], [0], [0], [1], [0, 0, 1, 1], [], []>} : vector<8x128xbf16>, vector<128x384xbf16>, vector<8x384xf32> -> vector<8x384xf32>
    %178 = vector.extract_strided_slice %175 {offsets = [0, 0], sizes = [8, 128], strides = [1, 1]} : vector<8x384xf32> to vector<8x128xf32>
    %179 = vector.extract_strided_slice %177 {offsets = [0, 0], sizes = [8, 128], strides = [1, 1]} : vector<8x384xf32> to vector<8x128xf32>
    %180 = arith.addf %178, %179 : vector<8x128xf32>
    %181 = arith.negf %180 : vector<8x128xf32>
    %182 = math.exp %181 : vector<8x128xf32>
    %cst_40 = arith.constant 1.000000e+00 : f32
    %183 = vector.broadcast %cst_40 : f32 to vector<8x128xf32>
    %184 = arith.addf %183, %182 : vector<8x128xf32>
    %185 = arith.divf %183, %184 : vector<8x128xf32>
    %186 = vector.extract_strided_slice %175 {offsets = [0, 128], sizes = [8, 128], strides = [1, 1]} : vector<8x384xf32> to vector<8x128xf32>
    %187 = vector.extract_strided_slice %177 {offsets = [0, 128], sizes = [8, 128], strides = [1, 1]} : vector<8x384xf32> to vector<8x128xf32>
    %188 = arith.addf %186, %187 : vector<8x128xf32>
    %189 = arith.negf %188 : vector<8x128xf32>
    %190 = math.exp %189 : vector<8x128xf32>
    %cst_41 = arith.constant 1.000000e+00 : f32
    %191 = vector.broadcast %cst_41 : f32 to vector<8x128xf32>
    %192 = arith.addf %191, %190 : vector<8x128xf32>
    %193 = arith.divf %191, %192 : vector<8x128xf32>
    %194 = vector.extract_strided_slice %175 {offsets = [0, 256], sizes = [8, 128], strides = [1, 1]} : vector<8x384xf32> to vector<8x128xf32>
    %195 = vector.extract_strided_slice %177 {offsets = [0, 256], sizes = [8, 128], strides = [1, 1]} : vector<8x384xf32> to vector<8x128xf32>
    %196 = arith.addf %195, %13 : vector<8x128xf32>
    %197 = arith.mulf %185, %196 : vector<8x128xf32>
    %198 = arith.addf %194, %197 : vector<8x128xf32>
    %199 = math.tanh %198 : vector<8x128xf32>
    %cst_42 = arith.constant 1.000000e+00 : f32
    %200 = vector.broadcast %cst_42 : f32 to vector<8x128xf32>
    %201 = arith.subf %200, %193 : vector<8x128xf32>
    %202 = arith.mulf %201, %199 : vector<8x128xf32>
    %203 = arith.mulf %193, %172 : vector<8x128xf32>
    %204 = arith.addf %202, %203 : vector<8x128xf32>
    %205 = vector.extract_strided_slice %204 {offsets = [0, 0], sizes = [8, 32], strides = [1, 1]} : vector<8x128xf32> to vector<8x32xf32>
    %c0_43 = arith.constant 0 : index
    %c160 = arith.constant 160 : index
    %206 = vector.load %arg15[%c0_43, %c160] : memref<8x256xf32, #tpu.memory_space<vmem>>, vector<8x32xf32>
    tpu.vector_store %arg15[%c0_43, %c160], %205 {strides = array<i32>} : memref<8x256xf32, #tpu.memory_space<vmem>>, vector<8x32xf32>,
    %207 = vector.extract_strided_slice %9 {offsets = [48, 0], sizes = [8, 384], strides = [1, 1]} : vector<64x384xf32> to vector<8x384xf32>
    %208 = arith.truncf %204 : vector<8x128xf32> to vector<8x128xbf16>
    %cst_44 = arith.constant dense<0.000000e+00> : vector<8x384xf32>
    %209 = tpu.matmul %208, %10, %cst_44 {dimension_numbers = #tpu.dot_dimension_numbers<[1], [0], [0], [1], [0, 0, 1, 1], [], []>} : vector<8x128xbf16>, vector<128x384xbf16>, vector<8x384xf32> -> vector<8x384xf32>
    %210 = vector.extract_strided_slice %207 {offsets = [0, 0], sizes = [8, 128], strides = [1, 1]} : vector<8x384xf32> to vector<8x128xf32>
    %211 = vector.extract_strided_slice %209 {offsets = [0, 0], sizes = [8, 128], strides = [1, 1]} : vector<8x384xf32> to vector<8x128xf32>
    %212 = arith.addf %210, %211 : vector<8x128xf32>
    %213 = arith.negf %212 : vector<8x128xf32>
    %214 = math.exp %213 : vector<8x128xf32>
    %cst_45 = arith.constant 1.000000e+00 : f32
    %215 = vector.broadcast %cst_45 : f32 to vector<8x128xf32>
    %216 = arith.addf %215, %214 : vector<8x128xf32>
    %217 = arith.divf %215, %216 : vector<8x128xf32>
    %218 = vector.extract_strided_slice %207 {offsets = [0, 128], sizes = [8, 128], strides = [1, 1]} : vector<8x384xf32> to vector<8x128xf32>
    %219 = vector.extract_strided_slice %209 {offsets = [0, 128], sizes = [8, 128], strides = [1, 1]} : vector<8x384xf32> to vector<8x128xf32>
    %220 = arith.addf %218, %219 : vector<8x128xf32>
    %221 = arith.negf %220 : vector<8x128xf32>
    %222 = math.exp %221 : vector<8x128xf32>
    %cst_46 = arith.constant 1.000000e+00 : f32
    %223 = vector.broadcast %cst_46 : f32 to vector<8x128xf32>
    %224 = arith.addf %223, %222 : vector<8x128xf32>
    %225 = arith.divf %223, %224 : vector<8x128xf32>
    %226 = vector.extract_strided_slice %207 {offsets = [0, 256], sizes = [8, 128], strides = [1, 1]} : vector<8x384xf32> to vector<8x128xf32>
    %227 = vector.extract_strided_slice %209 {offsets = [0, 256], sizes = [8, 128], strides = [1, 1]} : vector<8x384xf32> to vector<8x128xf32>
    %228 = arith.addf %227, %13 : vector<8x128xf32>
    %229 = arith.mulf %217, %228 : vector<8x128xf32>
    %230 = arith.addf %226, %229 : vector<8x128xf32>
    %231 = math.tanh %230 : vector<8x128xf32>
    %cst_47 = arith.constant 1.000000e+00 : f32
    %232 = vector.broadcast %cst_47 : f32 to vector<8x128xf32>
    %233 = arith.subf %232, %225 : vector<8x128xf32>
    %234 = arith.mulf %233, %231 : vector<8x128xf32>
    %235 = arith.mulf %225, %204 : vector<8x128xf32>
    %236 = arith.addf %234, %235 : vector<8x128xf32>
    %237 = vector.extract_strided_slice %236 {offsets = [0, 0], sizes = [8, 32], strides = [1, 1]} : vector<8x128xf32> to vector<8x32xf32>
    %c0_48 = arith.constant 0 : index
    %c192 = arith.constant 192 : index
    %238 = vector.load %arg15[%c0_48, %c192] : memref<8x256xf32, #tpu.memory_space<vmem>>, vector<8x32xf32>
    tpu.vector_store %arg15[%c0_48, %c192], %237 {strides = array<i32>} : memref<8x256xf32, #tpu.memory_space<vmem>>, vector<8x32xf32>,
    %239 = vector.extract_strided_slice %9 {offsets = [56, 0], sizes = [8, 384], strides = [1, 1]} : vector<64x384xf32> to vector<8x384xf32>
    %240 = arith.truncf %236 : vector<8x128xf32> to vector<8x128xbf16>
    %cst_49 = arith.constant dense<0.000000e+00> : vector<8x384xf32>
    %241 = tpu.matmul %240, %10, %cst_49 {dimension_numbers = #tpu.dot_dimension_numbers<[1], [0], [0], [1], [0, 0, 1, 1], [], []>} : vector<8x128xbf16>, vector<128x384xbf16>, vector<8x384xf32> -> vector<8x384xf32>
    %242 = vector.extract_strided_slice %239 {offsets = [0, 0], sizes = [8, 128], strides = [1, 1]} : vector<8x384xf32> to vector<8x128xf32>
    %243 = vector.extract_strided_slice %241 {offsets = [0, 0], sizes = [8, 128], strides = [1, 1]} : vector<8x384xf32> to vector<8x128xf32>
    %244 = arith.addf %242, %243 : vector<8x128xf32>
    %245 = arith.negf %244 : vector<8x128xf32>
    %246 = math.exp %245 : vector<8x128xf32>
    %cst_50 = arith.constant 1.000000e+00 : f32
    %247 = vector.broadcast %cst_50 : f32 to vector<8x128xf32>
    %248 = arith.addf %247, %246 : vector<8x128xf32>
    %249 = arith.divf %247, %248 : vector<8x128xf32>
    %250 = vector.extract_strided_slice %239 {offsets = [0, 128], sizes = [8, 128], strides = [1, 1]} : vector<8x384xf32> to vector<8x128xf32>
    %251 = vector.extract_strided_slice %241 {offsets = [0, 128], sizes = [8, 128], strides = [1, 1]} : vector<8x384xf32> to vector<8x128xf32>
    %252 = arith.addf %250, %251 : vector<8x128xf32>
    %253 = arith.negf %252 : vector<8x128xf32>
    %254 = math.exp %253 : vector<8x128xf32>
    %cst_51 = arith.constant 1.000000e+00 : f32
    %255 = vector.broadcast %cst_51 : f32 to vector<8x128xf32>
    %256 = arith.addf %255, %254 : vector<8x128xf32>
    %257 = arith.divf %255, %256 : vector<8x128xf32>
    %258 = vector.extract_strided_slice %239 {offsets = [0, 256], sizes = [8, 128], strides = [1, 1]} : vector<8x384xf32> to vector<8x128xf32>
    %259 = vector.extract_strided_slice %241 {offsets = [0, 256], sizes = [8, 128], strides = [1, 1]} : vector<8x384xf32> to vector<8x128xf32>
    %260 = arith.addf %259, %13 : vector<8x128xf32>
    %261 = arith.mulf %249, %260 : vector<8x128xf32>
    %262 = arith.addf %258, %261 : vector<8x128xf32>
    %263 = math.tanh %262 : vector<8x128xf32>
    %cst_52 = arith.constant 1.000000e+00 : f32
    %264 = vector.broadcast %cst_52 : f32 to vector<8x128xf32>
    %265 = arith.subf %264, %257 : vector<8x128xf32>
    %266 = arith.mulf %265, %263 : vector<8x128xf32>
    %267 = arith.mulf %257, %236 : vector<8x128xf32>
    %268 = arith.addf %266, %267 : vector<8x128xf32>
    %269 = vector.extract_strided_slice %268 {offsets = [0, 0], sizes = [8, 32], strides = [1, 1]} : vector<8x128xf32> to vector<8x32xf32>
    %c0_53 = arith.constant 0 : index
    %c224 = arith.constant 224 : index
    %270 = vector.load %arg15[%c0_53, %c224] : memref<8x256xf32, #tpu.memory_space<vmem>>, vector<8x32xf32>
    tpu.vector_store %arg15[%c0_53, %c224], %269 {strides = array<i32>} : memref<8x256xf32, #tpu.memory_space<vmem>>, vector<8x32xf32>,
    %c0_54 = arith.constant 0 : index
    %c0_55 = arith.constant 0 : index
    %271 = vector.load %arg15[%c0_54, %c0_55] : memref<8x256xf32, #tpu.memory_space<vmem>>, vector<8x256xf32>
    %272 = arith.truncf %271 : vector<8x256xf32> to vector<8x256xbf16>
    %c0_56 = arith.constant 0 : index
    %c0_57 = arith.constant 0 : index
    %273 = vector.load %arg6[%c0_56, %c0_57] : memref<256x128xbf16, #tpu.memory_space<vmem>>, vector<256x128xbf16>
    %cst_58 = arith.constant dense<0.000000e+00> : vector<8x128xf32>
    %274 = tpu.matmul %272, %273, %cst_58 {dimension_numbers = #tpu.dot_dimension_numbers<[1], [0], [0], [1], [0, 0, 1, 1], [], []>} : vector<8x256xbf16>, vector<256x128xbf16>, vector<8x128xf32> -> vector<8x128xf32>
    %275 = math.tanh %274 : vector<8x128xf32>
    %276 = arith.truncf %275 : vector<8x128xf32> to vector<8x128xbf16>
    %c0_59 = arith.constant 0 : index
    %c0_60 = arith.constant 0 : index
    %277 = vector.load %arg7[%c0_59, %c0_60] : memref<128x8xbf16, #tpu.memory_space<vmem>>, vector<128x8xbf16>
    %cst_61 = arith.constant dense<0.000000e+00> : vector<8x8xf32>
    %278 = tpu.matmul %276, %277, %cst_61 {dimension_numbers = #tpu.dot_dimension_numbers<[1], [0], [0], [1], [0, 0, 1, 1], [], []>} : vector<8x128xbf16>, vector<128x8xbf16>, vector<8x8xf32> -> vector<8x8xf32>
    %cst_62 = arith.constant dense<0xFF800000> : vector<8xf32>
    %279 = vector.multi_reduction <maximumf>, %278, %cst_62 [1] : vector<8x8xf32> to vector<8xf32>
    %280 = vector.shape_cast %279 : vector<8xf32> to vector<8x1xf32>
    %281 = vector.broadcast %280 : vector<8x1xf32> to vector<8x8xf32>
    %282 = arith.subf %278, %281 : vector<8x8xf32>
    %283 = math.exp %282 : vector<8x8xf32>
    %cst_63 = arith.constant dense<0.000000e+00> : vector<8xf32>
    %284 = vector.multi_reduction <add>, %283, %cst_63 [1] : vector<8x8xf32> to vector<8xf32>
    %285 = vector.shape_cast %284 : vector<8xf32> to vector<8x1xf32>
    %286 = vector.broadcast %285 : vector<8x1xf32> to vector<8x8xf32>
    %287 = arith.divf %283, %286 : vector<8x8xf32>
    %288 = arith.truncf %287 : vector<8x8xf32> to vector<8x8xbf16>
    %c0_64 = arith.constant 0 : index
    %c0_65 = arith.constant 0 : index
    %289 = vector.load %arg8[%c0_64, %c0_65] : memref<8x256xbf16, #tpu.memory_space<vmem>>, vector<8x256xbf16>
    %cst_66 = arith.constant dense<0.000000e+00> : vector<8x256xf32>
    %290 = tpu.matmul %288, %289, %cst_66 {dimension_numbers = #tpu.dot_dimension_numbers<[1], [0], [0], [1], [0, 0, 1, 1], [], []>} : vector<8x8xbf16>, vector<8x256xbf16>, vector<8x256xf32> -> vector<8x256xf32>
    %291 = arith.mulf %271, %290 : vector<8x256xf32>
    %292 = arith.truncf %291 : vector<8x256xf32> to vector<8x256xbf16>
    %c0_67 = arith.constant 0 : index
    %c0_68 = arith.constant 0 : index
    %293 = vector.load %arg9[%c0_67, %c0_68] : memref<256x32xbf16, #tpu.memory_space<vmem>>, vector<256x32xbf16>
    %cst_69 = arith.constant dense<0.000000e+00> : vector<8x32xf32>
    %294 = tpu.matmul %292, %293, %cst_69 {dimension_numbers = #tpu.dot_dimension_numbers<[1], [0], [0], [1], [0, 0, 1, 1], [], []>} : vector<8x256xbf16>, vector<256x32xbf16>, vector<8x32xf32> -> vector<8x32xf32>
    %c0_70 = arith.constant 0 : index
    %c0_71 = arith.constant 0 : index
    %295 = vector.load %arg10[%c0_70, %c0_71] : memref<256x368xbf16, #tpu.memory_space<vmem>>, vector<256x368xbf16>
    %cst_72 = arith.constant dense<0.000000e+00> : vector<8x368xf32>
    %296 = tpu.matmul %272, %295, %cst_72 {dimension_numbers = #tpu.dot_dimension_numbers<[1], [0], [0], [1], [0, 0, 1, 1], [], []>} : vector<8x256xbf16>, vector<256x368xbf16>, vector<8x368xf32> -> vector<8x368xf32>
    %c0_73 = arith.constant 0 : index
    %c0_74 = arith.constant 0 : index
    %297 = vector.load %arg11[%c0_73, %c0_74] : memref<1x368xf32, #tpu.memory_space<vmem>>, vector<1x368xf32>
    %298 = vector.broadcast %297 : vector<1x368xf32> to vector<8x368xf32>
    %299 = arith.addf %296, %298 : vector<8x368xf32>
    %300 = arith.mulf %299, %299 : vector<8x368xf32>
    %301 = arith.truncf %300 : vector<8x368xf32> to vector<8x368xbf16>
    %c0_75 = arith.constant 0 : index
    %c0_76 = arith.constant 0 : index
    %302 = vector.load %arg12[%c0_75, %c0_76] : memref<368x23xbf16, #tpu.memory_space<vmem>>, vector<368x23xbf16>
    %cst_77 = arith.constant dense<0.000000e+00> : vector<8x23xf32>
    %303 = tpu.matmul %301, %302, %cst_77 {dimension_numbers = #tpu.dot_dimension_numbers<[1], [0], [0], [1], [0, 0, 1, 1], [], []>} : vector<8x368xbf16>, vector<368x23xbf16>, vector<8x23xf32> -> vector<8x23xf32>
    %cst_78 = arith.constant 1.000000e+00 : f32
    %304 = vector.broadcast %cst_78 : f32 to vector<8x23xf32>
    %305 = arith.addf %304, %303 : vector<8x23xf32>
    %cst_79 = arith.constant 9.99999993E-9 : f32
    %306 = vector.broadcast %cst_79 : f32 to vector<8x23xf32>
    %307 = arith.addf %303, %306 : vector<8x23xf32>
    %308 = math.sqrt %307 : vector<8x23xf32>
    %309 = arith.mulf %305, %308 : vector<8x23xf32>
    %310 = arith.divf %303, %309 : vector<8x23xf32>
    %311 = arith.truncf %310 : vector<8x23xf32> to vector<8x23xbf16>
    %c0_80 = arith.constant 0 : index
    %c0_81 = arith.constant 0 : index
    %312 = vector.load %arg13[%c0_80, %c0_81] : memref<23x368xbf16, #tpu.memory_space<vmem>>, vector<23x368xbf16>
    %cst_82 = arith.constant dense<0.000000e+00> : vector<8x368xf32>
    %313 = tpu.matmul %311, %312, %cst_82 {dimension_numbers = #tpu.dot_dimension_numbers<[1], [0], [0], [1], [0, 0, 1, 1], [], []>} : vector<8x23xbf16>, vector<23x368xbf16>, vector<8x368xf32> -> vector<8x368xf32>
    %314 = arith.mulf %299, %313 : vector<8x368xf32>
    %c0_83 = arith.constant 0 : index
    %c0_84 = arith.constant 0 : index
    %315 = vector.load %arg14[%c0_83, %c0_84] : memref<8x400xf32, #tpu.memory_space<vmem>>, vector<8x32xf32>
    tpu.vector_store %arg14[%c0_83, %c0_84], %294 {strides = array<i32>} : memref<8x400xf32, #tpu.memory_space<vmem>>, vector<8x32xf32>,
    %c0_85 = arith.constant 0 : index
    %c32_86 = arith.constant 32 : index
    %316 = vector.load %arg14[%c0_85, %c32_86] : memref<8x400xf32, #tpu.memory_space<vmem>>, vector<8x368xf32>
    tpu.vector_store %arg14[%c0_85, %c32_86], %314 {strides = array<i32>} : memref<8x400xf32, #tpu.memory_space<vmem>>, vector<8x368xf32>,
    return
  }
}

</mosaic_0001>

<bundles_post_ra>
// kernel: _lambda_.1
= control target key start
LH: loop header
LB: loop body
LE: loop exit
PB: predicated region body
PF: predicated region fallthrough
CT: control target
= control target key end

     0   :  { %19 = vsyncpa [#allocation4], 0  ;;  %s4499_s0 = inlined_call_operand.hbm [shape: f32[64,32], index: 0, kind: input, shape index: {}]   ;;  %s4500_s1 = inlined_call_operand.hbm [shape: bf16[64,64], index: 1, kind: input, shape index: {}]   ;;  %s4501_s2 = inlined_call_operand.hbm [shape: bf16[32,384], index: 2, kind: input, shape index: {}]   ;;  %s4502_s3 = inlined_call_operand.hbm [shape: bf16[128,384], index: 3, kind: input, shape index: {}]   ;;  %s4503_s4 = inlined_call_operand.hbm [shape: f32[1,384], index: 4, kind: input, shape index: {}]   ;;  %s4504_s5 = inlined_call_operand.hbm [shape: f32[1,128], index: 5, kind: input, shape index: {}]   ;;  %s4505_s6 = inlined_call_operand.hbm [shape: bf16[256,128], index: 6, kind: input, shape index: {}]   ;;  %s4506_s7 = inlined_call_operand.hbm [shape: bf16[128,8], index: 7, kind: input, shape index: {}]   ;;  %s4507_s8 = inlined_call_operand.vmem [shape: bf16[8,256], index: 8, kind: input, shape index: {}]   ;;  %s4508_s9 = inlined_call_operand.hbm [shape: bf16[256,32], index: 9, kind: input, shape index: {}]   ;;  %s4509_s10 = inlined_call_operand.hbm [shape: bf16[256,368], index: 10, kind: input, shape index: {}]   ;;  %s4510_s11 = inlined_call_operand.vmem [shape: f32[1,368], index: 11, kind: input, shape index: {}]   ;;  %s4511_s12 = inlined_call_operand.hbm [shape: bf16[368,23], index: 12, kind: input, shape index: {}]   ;;  %s4512_s13 = inlined_call_operand.hbm [shape: bf16[23,368], index: 13, kind: input, shape index: {}]   ;;  %s4513_s14 = inlined_call_operand.hbm [shape: f32[8,400], index: 14, kind: output, shape index: {}]  }
   0x1   :  { %20 = vsyncpa [#allocation7], 0 }
   0x2   :  { %21 = vsyncpa [#allocation10], 0 }
   0x3   :  { %22 = vsyncpa [#allocation13], 0 }
   0x4   :  { %23 = vsyncpa [#allocation16], 0 }
   0x5   :  { %24 = vsyncpa [#allocation19], 0 }
   0x6   :  { %25 = vsyncpa [#allocation22], 0  ;;  %s44_s15 = sshll.u32 %s4500_s1, 4  ;;  %s45_s15 = int_to_ptr.hbm [resolvable:$true] %s44_s15 }
   0x7   :  { %26 = vsyncpa [#allocation5], 0  ;;  %s3855_s16 = smov [#allocation6]   ;;  %s3856_s18 = smov 64  }
   0x8   :  { %s46_s17 = sshll.u32 %s3855_s16, 4  ;;  %s3857_s19 = smov 4   ;;  %s47_s17 = int_to_ptr.vmem [resolvable:$true] %s46_s17 }
   0x9   :  { %52 = dma.hbm_to_vmem [thread:$0]  %s45_s15, 512, %s47_s17, [#allocation7], %s3856_s18, %s3856_s18, %s3857_s19  }
   0xa   :  { %s70_s22 = sshll.u32 %s4502_s3, 4  ;;  %s3858_s23 = smov [#allocation9]   ;;  %s71_s22 = int_to_ptr.hbm [resolvable:$true] %s70_s22 }
   0xb   :  { %s72_s24 = sshll.u32 %s3858_s23, 4  ;;  %s95_s26 = sshll.u32 %s4504_s5, 4  ;;  %s73_s24 = int_to_ptr.vmem [resolvable:$true] %s72_s24  ;;  %s96_s26 = int_to_ptr.hbm [resolvable:$true] %s95_s26 }
   0xc   :  { %s3859_s27 = smov 192   ;;  %s3860_s28 = smov 12  }
   0xd   :  { %78 = dma.hbm_to_vmem [thread:$0]  %s71_s22, 3072, %s73_s24, [#allocation10], %s3859_s27, %s3859_s27, %s3860_s28  }
   0xe   :  { %s118_s15 = sshll.u32 %s4506_s7, 4  ;;  %s3861_s3 = smov [#allocation12]   ;;  %s119_s15 = int_to_ptr.hbm [resolvable:$true] %s118_s15 }
   0xf   :  { %s97_s16 = sshll.u32 %s3861_s3, 4  ;;  %s3862_s17 = smov [#allocation15]   ;;  %s98_s16 = int_to_ptr.vmem [resolvable:$true] %s97_s16 }
  0x10   :  { %100 = dma.hbm_to_vmem [thread:$0]  %s96_s26, 16, %s98_s16, [#allocation13]  }
  0x11   :  { %s120_s20 = sshll.u32 %s3862_s17, 4  ;;  %s146_s23 = sshll.u32 %s4509_s10, 4  ;;  %s121_s20 = int_to_ptr.vmem [resolvable:$true] %s120_s20  ;;  %s147_s23 = int_to_ptr.hbm [resolvable:$true] %s146_s23 }
  0x12   :  { %126 = dma.hbm_to_vmem [thread:$0]  %s119_s15, 1024, %s121_s20, [#allocation16], %s3856_s18, %s3856_s18, %s3857_s19  }
  0x13   :  { %s31_s7 = sshll.u32 %s4499_s0, 4  ;;  %s3863_s25 = smov [#allocation18]   ;;  %s32_s7 = int_to_ptr.hbm [resolvable:$true] %s31_s7 }
  0x14   :  { %s148_s1 = sshll.u32 %s3863_s25, 4  ;;  %s3864_s26 = smov [#allocation3]   ;;  %s149_s1 = int_to_ptr.vmem [resolvable:$true] %s148_s1 }
  0x15   :  { %154 = dma.hbm_to_vmem [thread:$0]  %s147_s23, 6144, %s149_s1, [#allocation19], %s3859_s27, %s3859_s27, %s3860_s28  }
  0x16   :  { %s33_s10 = sshll.u32 %s3864_s26, 4  ;;  %s3865_s29 = smov 128   ;;  %s34_s10 = int_to_ptr.vmem [resolvable:$true] %s33_s10 }
  0x17   :  { %s3866_s30 = smov 8   ;;  %s57_s16 = sshll.u32 %s4501_s2, 4  ;;  %s58_s16 = int_to_ptr.hbm [resolvable:$true] %s57_s16 }
  0x18   :  { %39 = dma.hbm_to_vmem [thread:$0]  %s32_s7, 1024, %s34_s10, [#allocation4], %s3865_s29, %s3865_s29, %s3866_s30  }
  0x19   :  { %s3867_s0 = smov [#allocation8]   ;;  %s84_s21 = sshll.u32 %s4503_s4, 4  ;;  %s85_s21 = int_to_ptr.hbm [resolvable:$true] %s84_s21 }
  0x1a   :  { %s59_s17 = sshll.u32 %s3867_s0, 4  ;;  %s3868_s23 = smov [#allocation11]   ;;  %s60_s17 = int_to_ptr.vmem [resolvable:$true] %s59_s17 }
  0x1b   :  { %65 = dma.hbm_to_vmem [thread:$0]  %s58_s16, 768, %s60_s17, [#allocation7], %s3859_s27, %s3859_s27, %s3860_s28  }
  0x1c   :  { %s86_s22 = sshll.u32 %s3868_s23, 4  ;;  %s105_s25 = sshll.u32 %s4505_s6, 4  ;;  %s87_s22 = int_to_ptr.vmem [resolvable:$true] %s86_s22  ;;  %s106_s25 = int_to_ptr.hbm [resolvable:$true] %s105_s25 }
  0x1d   :  { %89 = dma.hbm_to_vmem [thread:$0]  %s85_s21, 48, %s87_s22, [#allocation10]  }
  0x1e   :  { %s133_s26 = sshll.u32 %s4508_s9, 4  ;;  %s3869_s10 = smov [#allocation14]   ;;  %s134_s26 = int_to_ptr.hbm [resolvable:$true] %s133_s26 }
  0x1f   :  { %s107_s4 = sshll.u32 %s3869_s10, 4  ;;  %s3870_s29 = smov [#allocation17]   ;;  %s108_s4 = int_to_ptr.vmem [resolvable:$true] %s107_s4 }
  0x20   :  { %113 = dma.hbm_to_vmem [thread:$0]  %s106_s25, 2048, %s108_s4, [#allocation13], %s3856_s18, %s3856_s18, %s3857_s19  }
  0x21   :  { %s135_s30 = sshll.u32 %s3870_s29, 4  ;;  %s161_s6 = sshll.u32 %s4511_s12, 4  ;;  %s136_s30 = int_to_ptr.vmem [resolvable:$true] %s135_s30  ;;  %s162_s6 = int_to_ptr.hbm [resolvable:$true] %s161_s6 }
  0x22   :  { %141 = dma.hbm_to_vmem [thread:$0]  %s134_s26, 2048, %s136_s30, [#allocation16], %s3856_s18, %s3856_s18, %s3857_s19  }
  0x23   :  { %s174_s0 = sshll.u32 %s4512_s13, 4  ;;  %s3871_s17 = smov [#allocation20]   ;;  %s175_s0 = int_to_ptr.hbm [resolvable:$true] %s174_s0 }
  0x24   :  { %s163_s20 = sshll.u32 %s3871_s17, 4  ;;  %s3872_s5 = smov [#allocation21]   ;;  %s164_s20 = int_to_ptr.vmem [resolvable:$true] %s163_s20 }
  0x25   :  { %169 = dma.hbm_to_vmem [thread:$0]  %s162_s6, 2944, %s164_s20, [#allocation19], %s3856_s18, %s3856_s18, %s3857_s19  }
  0x26   :  { %s176_s12 = sshll.u32 %s3872_s5, 4  ;;  %s177_s12 = int_to_ptr.vmem [resolvable:$true] %s176_s12 }
  0x27   :  { %182 = dma.hbm_to_vmem [thread:$0]  %s175_s0, 576, %s177_s12, [#allocation22], %s3859_s27, %s3859_s27, %s3860_s28  }
  0x28   :  { %3839 = dma.done.wait [#allocation4], 1024  }
  0x29   :  { %3840 = vsyncadd [#allocation4], 4294966272 }
  0x2a   :  { %3841 = dma.done.wait [#allocation7], 1280  }
  0x2b   :  { %3842 = vsyncadd [#allocation7], 4294966016 }
  0x2c   :  { %3843 = dma.done.wait [#allocation10], 3120  }
  0x2d   :  { %3844 = vsyncadd [#allocation10], 4294964176 }
  0x2e   :  { %3845 = dma.done.wait [#allocation13], 2064  }
  0x2f   :  { %3846 = vsyncadd [#allocation13], 4294965232 }
  0x30   :  { %3847 = dma.done.wait [#allocation16], 3072  }
  0x31   :  { %3848 = vsyncadd [#allocation16], 4294964224 }
  0x32   :  { %3849 = dma.done.wait [#allocation19], 9088  }
  0x33   :  { %3850 = vsyncadd [#allocation19], 4294958208 }
  0x34   :  { %3851 = dma.done.wait [#allocation22], 576  }
  0x35   :  { %3852 = vsyncadd [#allocation22], 4294966720  ;;  %v238_v0 = vld [vmem:[#allocation3 + $0x30] sm:$0xff]  ;;  %v239_v1 = vld [vmem:[#allocation3 + $0x38] sm:$0xff]  ;;  %vm272_vm0 = vcmask 523264   ;;  %vm366_vm1 = vcmask 261120  }
  0x36   :  { %v236_v2 = vld [vmem:[#allocation3 + $0x20] sm:$0xff]  ;;  %v243_v3 = vpack.c.bf16 %v239_v1, %v238_v0  ;;  %v237_v4 = vld [vmem:[#allocation3 + $0x28] sm:$0xff]  ;;  %v234_v6 = vld [vmem:[#allocation3 + $0x10] sm:$0xff]  ;;  %s3874_s13 = smov 96   ;;  %s3875_s19 = smov 32  }
  0x37   :  { %v242_v5 = vpack.c.bf16 %v237_v4, %v236_v2  ;;  %v235_v7 = vld [vmem:[#allocation3 + $0x18] sm:$0xff]  ;;  %v232_v9 = vld [vmem:[#allocation3] sm:$0xff]  ;;  %v233_v10 = vld [vmem:[#allocation3 + $0x8] sm:$0xff]  ;;  %s2618_s24 = sshll.u32 %s4513_s14, 4  ;;  %s2619_s24 = int_to_ptr.hbm [resolvable:$true] %s2618_s24 }
  0x38   :  { %289 = vmatpush.bf16.msra.mxu0 %v243_v3  ;;  %v241_v8 = vpack.c.bf16 %v235_v7, %v234_v6  ;;  %v240_v11 = vpack.c.bf16 %v233_v10, %v232_v9  ;;  %v3264_v12 = vld [vmem:[#allocation6] sm:$0xff]  ;;  %v3265_v13 = vld [vmem:[#allocation6 + $0x8] sm:$0xff]  ;;  %v3266_v14 = vld [vmem:[#allocation6 + $0x10] sm:$0xff] }
  0x39   :  { %v3267_v15 = vld [vmem:[#allocation6 + $0x18] sm:$0xff]  ;;  %v3272_v17 = vld [vmem:[#allocation8 + $0x20] sm:$0xf0]  ;;  %v2670_v20 = vld [vmem:[#allocation8 + $0x24] sm:$0xf0] }
  0x3a   :  { %v2668_v16 = vld [vmem:[#allocation8 + $0x18] sm:$0xf]  ;;  %v3271_v18 = vld [vmem:[#allocation8 + $0x1c] sm:$0xf]  ;;  %v2676_v21 = vld [vmem:[#allocation8 + $0x20] sm:$0xf] }
  0x3b   :  { %v2669_v19 = vor.u32 %v3272_v17, %v2668_v16  ;;  %v3273_v22 = vld [vmem:[#allocation8 + $0x28] sm:$0xf0]  ;;  %v2673_v23 = vor.u32 %v3271_v18, %v2670_v20  ;;  %v2656_v25 = vld [vmem:[#allocation8] sm:$0xf]  ;;  %v3268_v27 = vld [vmem:[#allocation8 + $0x4] sm:$0xf] }
  0x3c   :  { %290 = vmatpush.bf16.msra.mxu0 %v242_v5  ;;  %v2677_v24 = vor.u32 %v3273_v22, %v2676_v21  ;;  %v3269_v26 = vld [vmem:[#allocation8 + $0x8] sm:$0xf0]  ;;  %v2658_v29 = vld [vmem:[#allocation8 + $0xc] sm:$0xf0]  ;;  %v2664_v30 = vld [vmem:[#allocation8 + $0x8] sm:$0xf] }
  0x3d   :  { %385 = vmatpush.bf16.msra.mxu1 %v2669_v19  ;;  %414 = vmatpush.bf16.msra.mxu2 %v2673_v23  ;;  %v2657_v28 = vor.u32 %v3269_v26, %v2656_v25  ;;  %v3270_v31 = vld [vmem:[#allocation8 + $0x10] sm:$0xf0]  ;;  %v2661_v32 = vor.u32 %v3268_v27, %v2658_v29  ;;  %v2776_v34 = vld [vmem:[#allocation9 + $0xa8] sm:$0xf]  ;;  %v3296_v35 = vld [vmem:[#allocation9 + $0xb0] sm:$0xf0] }
  0x3e   :  { %443 = vmatpush.bf16.msra.mxu3 %v2677_v24  ;;  %v2665_v33 = vor.u32 %v3270_v31, %v2664_v30  ;;  %v3295_v36 = vld [vmem:[#allocation9 + $0xac] sm:$0xf]  ;;  %v4016_v37 = vor.u32 %v3296_v35, %v2776_v34  ;;  %v2778_v38 = vld [vmem:[#allocation9 + $0xb4] sm:$0xf0]  ;;  %v2764_v40 = vld [vmem:[#allocation9 + $0x90] sm:$0xf] }
  0x3f   :  { %v4018_v39 = vor.u32 %v3295_v36, %v2778_v38  ;;  %v3293_v41 = vld [vmem:[#allocation9 + $0x98] sm:$0xf0]  ;;  %v3292_v42 = vld [vmem:[#allocation9 + $0x94] sm:$0xf]  ;;  %v2766_v44 = vld [vmem:[#allocation9 + $0x9c] sm:$0xf0] }
  0x40   :  { %291 = vmatpush.bf16.msra.mxu0 %v241_v8  ;;  %v4023_v43 = vor.u32 %v3293_v41, %v2764_v40  ;;  %v4025_v45 = vor.u32 %v3292_v42, %v2766_v44  ;;  %v2752_v46 = vld [vmem:[#allocation9 + $0x78] sm:$0xf]  ;;  %v3290_v47 = vld [vmem:[#allocation9 + $0x80] sm:$0xf0]  ;;  %v3289_v48 = vld [vmem:[#allocation9 + $0x7c] sm:$0xf] }
  0x41   :  { %386 = vmatpush.bf16.msra.mxu1 %v2657_v28  ;;  %415 = vmatpush.bf16.msra.mxu2 %v2661_v32  ;;  %v4030_v49 = vor.u32 %v3290_v47, %v2752_v46  ;;  %v2754_v50 = vld [vmem:[#allocation9 + $0x84] sm:$0xf0]  ;;  %v2784_v53 = vld [vmem:[#allocation9 + $0xb0] sm:$0xf]  ;;  %v3297_v54 = vld [vmem:[#allocation9 + $0xb8] sm:$0xf0] }
  0x42   :  { %444 = vmatpush.bf16.msra.mxu3 %v2665_v33  ;;  %v4032_v51 = vor.u32 %v3289_v48, %v2754_v50  ;;  %v2740_v55 = vld [vmem:[#allocation9 + $0x60] sm:$0xf]  ;;  %v4037_v56 = vor.u32 %v3297_v54, %v2784_v53  ;;  %v3287_v57 = vld [vmem:[#allocation9 + $0x68] sm:$0xf0]  ;;  %v3286_v58 = vld [vmem:[#allocation9 + $0x64] sm:$0xf] }
  0x43   :  { %v2742_v59 = vld [vmem:[#allocation9 + $0x6c] sm:$0xf0]  ;;  %v4039_v60 = vor.u32 %v3287_v57, %v2740_v55  ;;  %v2772_v0 = vld [vmem:[#allocation9 + $0x98] sm:$0xf]  ;;  %v3294_v1 = vld [vmem:[#allocation9 + $0xa0] sm:$0xf0] }
  0x44   :  { %292 = vmatpush.bf16.msra.mxu0 %v240_v11  ;;  %v4041_v61 = vor.u32 %v3286_v58, %v2742_v59  ;;  %v4047_v2 = vor.u32 %v3294_v1, %v2772_v0  ;;  %v2728_v3 = vld [vmem:[#allocation9 + $0x48] sm:$0xf]  ;;  %v3284_v4 = vld [vmem:[#allocation9 + $0x50] sm:$0xf0]  ;;  %v3283_v5 = vld [vmem:[#allocation9 + $0x4c] sm:$0xf] }
  0x45   :  { %630 = vmatpush.bf16.msrb.mxu1 %v4016_v37  ;;  %643 = vmatpush.bf16.msrb.mxu2 %v4018_v39  ;;  %v4053_v6 = vor.u32 %v3284_v4, %v2728_v3  ;;  %v2730_v7 = vld [vmem:[#allocation9 + $0x54] sm:$0xf0]  ;;  %v2760_v10 = vld [vmem:[#allocation9 + $0x80] sm:$0xf]  ;;  %v3291_v11 = vld [vmem:[#allocation9 + $0x88] sm:$0xf0] }
  0x46   :  { %656 = vmatpush.bf16.msrb.mxu3 %v4037_v56  ;;  %v4055_v8 = vor.u32 %v3283_v5, %v2730_v7  ;;  %v2718_v16 = vld [vmem:[#allocation9 + $0x3c] sm:$0xf0]  ;;  %v2748_v21 = vld [vmem:[#allocation9 + $0x68] sm:$0xf]  ;;  %v3288_v22 = vld [vmem:[#allocation9 + $0x70] sm:$0xf0] }
  0x47   :  { %2650 = vmatmul.msk.bf16.vlgmr.msra.gmra.mxu0 %vm272_vm0, %v3264_v12  ;;  %v2716_v12 = vld [vmem:[#allocation9 + $0x30] sm:$0xf]  ;;  %v4070_v23 = vor.u32 %v3288_v22, %v2748_v21  ;;  %v2704_v24 = vld [vmem:[#allocation9 + $0x18] sm:$0xf]  ;;  %v3278_v25 = vld [vmem:[#allocation9 + $0x20] sm:$0xf0] }
  0x48   :  { %719 = vmatpush.bf16.msrb.mxu0 %v4016_v37  ;;  %v3277_v26 = vld [vmem:[#allocation9 + $0x1c] sm:$0xf]  ;;  %v4076_v27 = vor.u32 %v3278_v25, %v2704_v24  ;;  %v2706_v28 = vld [vmem:[#allocation9 + $0x24] sm:$0xf0]  ;;  %v2736_v29 = vld [vmem:[#allocation9 + $0x50] sm:$0xf] }
  0x49   :  { %631 = vmatpush.bf16.msrb.mxu1 %v4023_v43  ;;  %644 = vmatpush.bf16.msrb.mxu2 %v4025_v45  ;;  %v3285_v30 = vld [vmem:[#allocation9 + $0x58] sm:$0xf0]  ;;  %v4078_v31 = vor.u32 %v3277_v26, %v2706_v28  ;;  %v2692_v33 = vld [vmem:[#allocation9] sm:$0xf]  ;;  %v3275_v34 = vld [vmem:[#allocation9 + $0x8] sm:$0xf0] }
  0x4a   :  { %657 = vmatpush.bf16.msrb.mxu3 %v4047_v2  ;;  %v4080_v32 = vor.u32 %v3285_v30, %v2736_v29  ;;  %v3274_v35 = vld [vmem:[#allocation9 + $0x4] sm:$0xf]  ;;  %v4083_v36 = vor.u32 %v3275_v34, %v2692_v33  ;;  %v2694_v38 = vld [vmem:[#allocation9 + $0xc] sm:$0xf0]  ;;  %v2724_v40 = vld [vmem:[#allocation9 + $0x38] sm:$0xf] }
  0x4b   :  { %v3282_v41 = vld [vmem:[#allocation9 + $0x40] sm:$0xf0]  ;;  %v4087_v44 = vor.u32 %v3274_v35, %v2694_v38  ;;  %v2712_v50 = vld [vmem:[#allocation9 + $0x20] sm:$0xf]  ;;  %v2700_v53 = vld [vmem:[#allocation9 + $0x8] sm:$0xf] }
  0x4c   :  { %720 = vmatpush.bf16.msrb.mxu0 %v4023_v43  ;;  %v4090_v46 = vor.u32 %v3282_v41, %v2724_v40  ;;  %v3276_v55 = vld [vmem:[#allocation9 + $0x10] sm:$0xf0]  ;;  %v326_v5 = vld [vmem:[#allocation11] sm:$0x7] }
  0x4d   :  { %632 = vmatpush.bf16.msrb.mxu1 %v4030_v49  ;;  %645 = vmatpush.bf16.msrb.mxu2 %v4032_v51  ;;  %v4110_v57 = vor.u32 %v3276_v55, %v2700_v53 }
  0x50   :  { %721 = vmatpush.bf16.msrb.mxu0 %v4030_v49 }
  0x51   :  { %633 = vmatpush.bf16.msrb.mxu1 %v4039_v60  ;;  %646 = vmatpush.bf16.msrb.mxu2 %v4041_v61 }
  0x54   :  { %722 = vmatpush.bf16.msrb.mxu0 %v4039_v60 }
  0x55   :  { %634 = vmatpush.bf16.msrb.mxu1 %v4053_v6  ;;  %647 = vmatpush.bf16.msrb.mxu2 %v4055_v8 }
  0x57   :  { %2651 = vmatmul.msk.bf16.gmra.mxu0 %vm272_vm0, %v3265_v13  ;;  %v4060_v13 = vor.u32 %v3291_v11, %v2760_v10 }
  0x58   :  { %723 = vmatpush.bf16.msrb.mxu0 %v4053_v6 }
  0x59   :  { %658 = vmatpush.bf16.msrb.mxu3 %v4060_v13 }
  0x5d   :  { %659 = vmatpush.bf16.msrb.mxu3 %v4070_v23 }
  0x61   :  { %660 = vmatpush.bf16.msrb.mxu3 %v4080_v32 }
  0x65   :  { %661 = vmatpush.bf16.msrb.mxu3 %v4090_v46 }
  0x67   :  { %2652 = vmatmul.msk.bf16.gmra.mxu0 %vm272_vm0, %v3266_v14  ;;  %v3281_v14 = vld [vmem:[#allocation9 + $0x38] sm:$0xf0] }
  0x68   :  { %v4062_v17 = vor.u32 %v3281_v14, %v2716_v12  ;;  %v4177_v14 = vperm.slane %v326_v5, 1 }
  0x6a   :  { %635 = vmatpush.bf16.msrb.mxu1 %v4062_v17  ;;  %724 = vmatpush.bf16.msrb.mxu0 %v4062_v17 }
  0x6e   :  { %636 = vmatpush.bf16.msrb.mxu1 %v4076_v27  ;;  %725 = vmatpush.bf16.msrb.mxu0 %v4076_v27 }
  0x72   :  { %637 = vmatpush.bf16.msrb.mxu1 %v4083_v36  ;;  %726 = vmatpush.bf16.msrb.mxu0 %v4083_v36 }
  0x76   :  { %826 = vmatpush.bf16.msra.mxu0 %v4018_v39 }
  0x77   :  { %2653 = vmatmul.msk.bf16.gmra.mxu0 %vm272_vm0, %v3267_v15  ;;  %v3280_v15 = vld [vmem:[#allocation9 + $0x34] sm:$0xf] }
  0x78   :  { %v4064_v18 = vor.u32 %v3280_v15, %v2718_v16  ;;  %v4179_v15 = vperm.slane %v326_v5, 2 }
  0x7a   :  { %648 = vmatpush.bf16.msrb.mxu2 %v4064_v18  ;;  %827 = vmatpush.bf16.msra.mxu0 %v4025_v45 }
  0x7e   :  { %649 = vmatpush.bf16.msrb.mxu2 %v4078_v31  ;;  %828 = vmatpush.bf16.msra.mxu0 %v4032_v51 }
  0x82   :  { %650 = vmatpush.bf16.msrb.mxu2 %v4087_v44  ;;  %829 = vmatpush.bf16.msra.mxu0 %v4041_v61 }
  0x86   :  { %830 = vmatpush.bf16.msra.mxu0 %v4055_v8 }
  0x8a   :  { %831 = vmatpush.bf16.msra.mxu0 %v4064_v18 }
  0x8e   :  { %832 = vmatpush.bf16.msra.mxu0 %v4078_v31 }
  0x92   :  { %833 = vmatpush.bf16.msra.mxu0 %v4087_v44 }
  0xc4   :  { %v294_v52 = vpop.f32.mrf.mxu0 }
  0xcc   :  { %v296_v62 = vpop.f32.mrf.mxu0 }
  0xcd   :  { %v314_v63 = vpack.c.bf16 %v296_v62, %v294_v52  ;;  %v3279_v52 = vld [vmem:[#allocation9 + $0x28] sm:$0xf0] }
  0xce   :  { %v4105_v54 = vor.u32 %v3279_v52, %v2712_v50 }
  0xcf   :  { %2678 = vmatmul.msk.bf16.vlgmr.msra.gmra.mxu1 %vm366_vm1, %v314_v63  ;;  %2682 = vmatmul.msk.bf16.vlgmr.msra.gmra.mxu2 %vm366_vm1, %v314_v63 }
  0xd0   :  { %2686 = vmatmul.msk.bf16.vlgmr.msra.gmra.mxu3 %vm366_vm1, %v314_v63  ;;  %732 = vmatpush.bf16.msra.mxu1 %v4018_v39  ;;  %v3873_v63 = vmov 0  }
  0xd1   :  { %745 = vmatpush.bf16.msra.mxu2 %v4037_v56  ;;  %662 = vmatpush.bf16.msrb.mxu3 %v4105_v54 }
  0xd4   :  { %v299_v9 = vpop.f32.mrf.mxu0  ;;  %733 = vmatpush.bf16.msra.mxu1 %v4025_v45 }
  0xd5   :  { %746 = vmatpush.bf16.msra.mxu2 %v4047_v2  ;;  %663 = vmatpush.bf16.msrb.mxu3 %v4110_v57 }
  0xd8   :  { %734 = vmatpush.bf16.msra.mxu1 %v4032_v51 }
  0xd9   :  { %747 = vmatpush.bf16.msra.mxu2 %v4060_v13  ;;  %813 = vmatpush.bf16.msra.mxu3 %v4016_v37 }
  0xdc   :  { %v301_v19 = vpop.f32.mrf.mxu0  ;;  %735 = vmatpush.bf16.msra.mxu1 %v4041_v61 }
  0xdd   :  { %v315_v20 = vpack.c.bf16 %v301_v19, %v299_v9  ;;  %748 = vmatpush.bf16.msra.mxu2 %v4070_v23  ;;  %814 = vmatpush.bf16.msra.mxu3 %v4023_v43  ;;  %v4170_v9 = vperm.slane %v326_v5, 0 }
  0xdf   :  { %2679 = vmatmul.msk.bf16.gmra.mxu1 %vm366_vm1, %v315_v20  ;;  %2683 = vmatmul.msk.bf16.gmra.mxu2 %vm366_vm1, %v315_v20 }
  0xe0   :  { %2687 = vmatmul.msk.bf16.gmra.mxu3 %vm366_vm1, %v315_v20  ;;  %736 = vmatpush.bf16.msra.mxu1 %v4055_v8 }
  0xe1   :  { %749 = vmatpush.bf16.msra.mxu2 %v4080_v32  ;;  %815 = vmatpush.bf16.msra.mxu3 %v4030_v49 }
  0xe4   :  { %v304_v42 = vpop.f32.mrf.mxu0  ;;  %737 = vmatpush.bf16.msra.mxu1 %v4064_v18 }
  0xe5   :  { %750 = vmatpush.bf16.msra.mxu2 %v4090_v46  ;;  %816 = vmatpush.bf16.msra.mxu3 %v4039_v60 }
  0xe8   :  { %738 = vmatpush.bf16.msra.mxu1 %v4078_v31 }
  0xe9   :  { %751 = vmatpush.bf16.msra.mxu2 %v4105_v54  ;;  %817 = vmatpush.bf16.msra.mxu3 %v4053_v6 }
  0xec   :  { %v306_v47 = vpop.f32.mrf.mxu0  ;;  %739 = vmatpush.bf16.msra.mxu1 %v4087_v44 }
  0xed   :  { %v316_v48 = vpack.c.bf16 %v306_v47, %v304_v42  ;;  %752 = vmatpush.bf16.msra.mxu2 %v4110_v57  ;;  %818 = vmatpush.bf16.msra.mxu3 %v4062_v17 }
  0xef   :  { %2680 = vmatmul.msk.bf16.gmra.mxu1 %vm366_vm1, %v316_v48  ;;  %2684 = vmatmul.msk.bf16.gmra.mxu2 %vm366_vm1, %v316_v48 }
  0xf0   :  { %2688 = vmatmul.msk.bf16.gmra.mxu3 %vm366_vm1, %v316_v48 }
  0xf1   :  { %819 = vmatpush.bf16.msra.mxu3 %v4076_v27 }
  0xf4   :  { %v309_v58 = vpop.f32.mrf.mxu0 }
  0xf5   :  { %820 = vmatpush.bf16.msra.mxu3 %v4083_v36 }
  0xfc   :  { %v311_v59 = vpop.f32.mrf.mxu0 }
  0xfd   :  { %v317_v62 = vpack.c.bf16 %v311_v59, %v309_v58 }
  0xff   :  { %2681 = vmatmul.msk.bf16.gmra.mxu1 %vm366_vm1, %v317_v62  ;;  %2685 = vmatmul.msk.bf16.gmra.mxu2 %vm366_vm1, %v317_v62 }
 0x100   :  { %2689 = vmatmul.msk.bf16.gmra.mxu3 %vm366_vm1, %v317_v62 }
 0x10f   :  { %638 = vmatmul.bf16.vlgmr.msrb.gmra.mxu1 %v3873_v63  ;;  %651 = vmatmul.bf16.vlgmr.msrb.gmra.mxu2 %v3873_v63 }
 0x110   :  { %664 = vmatmul.bf16.vlgmr.msrb.gmra.mxu3 %v3873_v63  ;;  %839 = vmatpush.bf16.msrb.mxu1 %v4037_v56 }
 0x111   :  { %907 = vmatpush.bf16.msrb.mxu2 %v4016_v37  ;;  %920 = vmatpush.bf16.msrb.mxu3 %v4018_v39 }
 0x114   :  { %840 = vmatpush.bf16.msrb.mxu1 %v4047_v2 }
 0x115   :  { %908 = vmatpush.bf16.msrb.mxu2 %v4023_v43  ;;  %921 = vmatpush.bf16.msrb.mxu3 %v4025_v45 }
 0x118   :  { %841 = vmatpush.bf16.msrb.mxu1 %v4060_v13 }
 0x119   :  { %909 = vmatpush.bf16.msrb.mxu2 %v4030_v49  ;;  %922 = vmatpush.bf16.msrb.mxu3 %v4032_v51 }
 0x11c   :  { %842 = vmatpush.bf16.msrb.mxu1 %v4070_v23 }
 0x11d   :  { %910 = vmatpush.bf16.msrb.mxu2 %v4039_v60  ;;  %923 = vmatpush.bf16.msrb.mxu3 %v4041_v61 }
 0x120   :  { %843 = vmatpush.bf16.msrb.mxu1 %v4080_v32 }
 0x121   :  { %911 = vmatpush.bf16.msrb.mxu2 %v4053_v6  ;;  %924 = vmatpush.bf16.msrb.mxu3 %v4055_v8 }
 0x124   :  { %844 = vmatpush.bf16.msrb.mxu1 %v4090_v46 }
 0x125   :  { %912 = vmatpush.bf16.msrb.mxu2 %v4062_v17  ;;  %925 = vmatpush.bf16.msrb.mxu3 %v4064_v18 }
 0x128   :  { %845 = vmatpush.bf16.msrb.mxu1 %v4105_v54 }
 0x129   :  { %913 = vmatpush.bf16.msrb.mxu2 %v4076_v27  ;;  %926 = vmatpush.bf16.msrb.mxu3 %v4078_v31 }
 0x12c   :  { %846 = vmatpush.bf16.msrb.mxu1 %v4110_v57 }
 0x12d   :  { %914 = vmatpush.bf16.msrb.mxu2 %v4083_v36  ;;  %927 = vmatpush.bf16.msrb.mxu3 %v4087_v44 }
 0x14c   :  { %v388_v0 = vpop.f32.mrf.mxu1 }
 0x14d   :  { %v389_v63 = vadd.f32 %v388_v0, %v4170_v9 }
 0x152   :  { %v417_v1 = vpop.f32.mrf.mxu2 }
 0x153   :  { %v4164_v3 = vpop.f32.mrf.mxu3 }
 0x154   :  { %v4166_v4 = vpop.f32.mrf.mxu1 }
 0x15a   :  { %v4168_v7 = vpop.f32.mrf.mxu2 }
 0x15b   :  { %v4172_v10 = vpop.f32.mrf.mxu3 }
 0x15c   :  { %v393_v11 = vpop.f32.mrf.mxu1 }
 0x15d   :  { %v4175_v12 = vadd.f32 %v393_v11, %v4170_v9 }
 0x162   :  { %v422_v16 = vpop.f32.mrf.mxu2 }
 0x163   :  { %v4182_v19 = vadd.f32 %v422_v16, %v4177_v14  ;;  %v451_v20 = vpop.f32.mrf.mxu3 }
 0x164   :  { %v4185_v21 = vadd.f32 %v451_v20, %v4179_v15  ;;  %v4187_v22 = vpop.f32.mrf.mxu1 }
 0x16a   :  { %v4189_v24 = vpop.f32.mrf.mxu2 }
 0x16b   :  { %v4191_v25 = vpop.f32.mrf.mxu3 }
 0x16c   :  { %v398_v26 = vpop.f32.mrf.mxu1 }
 0x16d   :  { %v4194_v28 = vadd.f32 %v398_v26, %v4170_v9 }
 0x172   :  { %v427_v29 = vpop.f32.mrf.mxu2 }
 0x173   :  { %v4197_v30 = vadd.f32 %v427_v29, %v4177_v14  ;;  %v456_v33 = vpop.f32.mrf.mxu3 }
 0x174   :  { %v4200_v34 = vadd.f32 %v456_v33, %v4179_v15  ;;  %v400_v35 = vpop.f32.mrf.mxu1  ;;  %v418_v33 = vadd.f32 %v417_v1, %v4177_v14 }
 0x175   :  { %v4203_v38 = vadd.f32 %v400_v35, %v4170_v9 }
 0x17a   :  { %v429_v40 = vpop.f32.mrf.mxu2 }
 0x17b   :  { %v4206_v41 = vadd.f32 %v429_v40, %v4177_v14  ;;  %v4208_v42 = vpop.f32.mrf.mxu3 }
 0x17c   :  { %4514 = vst [vmem:[#allocation32_spill] sm:$0xff] %v4208_v42  ;;  %v403_v47 = vpop.f32.mrf.mxu1 }
 0x17d   :  { %v4211_v48 = vadd.f32 %v403_v47, %v4170_v9 }
 0x17f   :  { %4515 = vst [vmem:[#allocation33_spill] sm:$0xff] %v4211_v48 }
 0x182   :  { %v432_v50 = vpop.f32.mrf.mxu2 }
 0x183   :  { %v4214_v52 = vadd.f32 %v432_v50, %v4177_v14  ;;  %v461_v53 = vpop.f32.mrf.mxu3 }
 0x184   :  { %v4217_v55 = vadd.f32 %v461_v53, %v4179_v15  ;;  %v405_v58 = vpop.f32.mrf.mxu1 }
 0x185   :  { %4516 = vst [vmem:[#allocation34_spill] sm:$0xff] %v4214_v52  ;;  %v4220_v59 = vadd.f32 %v405_v58, %v4170_v9 }
 0x186   :  { %4517 = vst [vmem:[#allocation35_spill] sm:$0xff] %v4217_v55 }
 0x187   :  { %4518 = vst [vmem:[#allocation36_spill] sm:$0xff] %v4220_v59 }
 0x18a   :  { %v434_v62 = vpop.f32.mrf.mxu2 }
 0x18b   :  { %v4224_v5 = vadd.f32 %v434_v62, %v4177_v14  ;;  %v463_v11 = vpop.f32.mrf.mxu3 }
 0x18c   :  { %v4227_v16 = vadd.f32 %v463_v11, %v4179_v15  ;;  %v639_v20 = vpop.f32.mrf.mxu1 }
 0x18d   :  { %4519 = vst [vmem:[#allocation37_spill] sm:$0xff] %v4224_v5  ;;  %v669_v26 = vadd.f32 %v639_v20, %v389_v63  ;;  %v4230_v20 = vld [vmem:[#allocation12] ss:$0 sm:$0xff] }
 0x18e   :  { %4520 = vst [vmem:[#allocation38_spill] sm:$0xff] %v4227_v16 }
 0x18f   :  { %v2786_v29 = vmul.f32 -1.442695, %v669_v26 }
 0x191   :  { %3436 = vpow2.f32 %v2786_v29 }
 0x192   :  { %v652_v35 = vpop.f32.mrf.mxu2 }
 0x193   :  { %v689_v40 = vadd.f32 %v652_v35, %v418_v33  ;;  %v665_v47 = vpop.f32.mrf.mxu3 }
 0x194   :  { %v641_v50 = vpop.f32.mrf.mxu1 }
 0x195   :  { %v2787_v53 = vmul.f32 -1.442695, %v689_v40 }
 0x197   :  { %v3437_v58 = vpop.eup %3436  ;;  %3438 = vpow2.f32 %v2787_v53  ;;  %v709_v53 = vadd.f32 %v4230_v20, %v665_v47 }
 0x198   :  { %v673_v0 = vadd.f32 1.0, %v3437_v58 }
 0x19a   :  { %3440 = vrcp.f32 %v673_v0  ;;  %v654_v62 = vpop.f32.mrf.mxu2  ;;  %v685_v26 = vand.u32 2147483648, %v673_v0  ;;  %v683_v33 = vand.u32 2147483647, %v673_v0  ;;  %vm679_vm3 = vweird.f32 %v673_v0 }
 0x19b   :  { %v667_v5 = vpop.f32.mrf.mxu3  ;;  %v447_v62 = vadd.f32 %v4164_v3, %v4179_v15 }
 0x19c   :  { %v686_v5 = vor.u32 1.1754944e-38, %v685_v26  ;;  %vm684_vm5 = vcmp.eq.f32.partialorder %v683_v33, 8.507059e+37 }
 0x19d   :  { %v3439_v59 = vpop.eup %3438 }
 0x19e   :  { %v693_v11 = vadd.f32 1.0, %v3439_v59 }
 0x1a0   :  { %v3441_v16 = vpop.eup %3440  ;;  %3442 = vrcp.f32 %v693_v11  ;;  %v705_v48 = vand.u32 2147483648, %v693_v11  ;;  %v703_v52 = vand.u32 2147483647, %v693_v11  ;;  %vm699_vm7 = vweird.f32 %v693_v11 }
 0x1a1   :  { %v675_v63 = vmul.f32 %v3441_v16, %v673_v0  ;;  %vm680_vm2 = vweird.f32 %v3441_v16 }
 0x1a2   :  { %vm681_vm4 = vmor %vm679_vm3, %vm680_vm2  ;;  %v706_v0 = vor.u32 1.1754944e-38, %v705_v48  ;;  %vm704_vm9 = vcmp.eq.f32.partialorder %v703_v52, 8.507059e+37  ;;  %v420_v48 = vadd.f32 %v4168_v7, %v4177_v14 }
 0x1a3   :  { %v676_v1 = vsub.f32 1.0, %v675_v63 }
 0x1a5   :  { %v677_v29 = vmul.f32 %v3441_v16, %v676_v1 }
 0x1a6   :  { %v3443_v35 = vpop.eup %3442 }
 0x1a7   :  { %v695_v40 = vmul.f32 %v3443_v35, %v693_v11  ;;  %v678_v50 = vadd.f32 %v3441_v16, %v677_v29  ;;  %vm700_vm6 = vweird.f32 %v3443_v35 }
 0x1a8   :  { %vm701_vm8 = vmor %vm699_vm7, %vm700_vm6 }
 0x1a9   :  { %v696_v58 = vsub.f32 1.0, %v695_v40  ;;  %v682_v59 = vsel %vm681_vm4, %v3441_v16, %v678_v50 }
 0x1aa   :  { %v687_v55 = vsel %vm684_vm5, %v686_v5, %v682_v59 }
 0x1ab   :  { %v697_v63 = vmul.f32 %v3443_v35, %v696_v58  ;;  %v710_v1 = vmul.f32 %v709_v53, %v687_v55 }
 0x1ad   :  { %v711_v42 = vadd.f32 %v710_v1, %v447_v62  ;;  %v698_v29 = vadd.f32 %v3443_v35, %v697_v63 }
 0x1af   :  { %3444 = vtanh.f32 %v711_v42  ;;  %v702_v47 = vsel %vm701_vm8, %v3443_v35, %v698_v29  ;;  %v391_v42 = vadd.f32 %v4166_v4, %v4170_v9 }
 0x1b0   :  { %v707_v26 = vsel %vm704_vm9, %v706_v0, %v702_v47 }
 0x1b1   :  { %v713_v16 = vsub.f32 1.0, %v707_v26  ;;  %v715_v50 = vmul.f32 0.0, %v707_v26 }
 0x1b5   :  { %v3445_v33 = vpop.eup %3444 }
 0x1b6   :  { %v714_v40 = vmul.f32 %v3445_v33, %v713_v16 }
 0x1b8   :  { %v4235_v3 = vadd.f32 %v715_v50, %v714_v40 }
 0x1ba   :  { %v718_v55 = vpack.c.bf16 %v4235_v3, %v4235_v3  ;;  %717 = vst.msk [vmem:[#allocation2] sm:$0xff] %vm366_vm1, %v4235_v3 }
 0x1bc   :  { %727 = vmatmul.bf16.vlgmr.msrb.gmra.mxu0 %v718_v55  ;;  %740 = vmatmul.bf16.vlgmr.msra.gmra.mxu1 %v718_v55 }
 0x1bd   :  { %753 = vmatmul.bf16.vlgmr.msra.gmra.mxu2 %v718_v55  ;;  %933 = vmatpush.bf16.msrb.mxu0 %v4037_v56 }
 0x1be   :  { %1001 = vmatpush.bf16.msra.mxu1 %v4016_v37  ;;  %1014 = vmatpush.bf16.msra.mxu2 %v4018_v39 }
 0x1c1   :  { %934 = vmatpush.bf16.msrb.mxu0 %v4047_v2 }
 0x1c2   :  { %1002 = vmatpush.bf16.msra.mxu1 %v4023_v43  ;;  %1015 = vmatpush.bf16.msra.mxu2 %v4025_v45 }
 0x1c5   :  { %935 = vmatpush.bf16.msrb.mxu0 %v4060_v13 }
 0x1c6   :  { %1003 = vmatpush.bf16.msra.mxu1 %v4030_v49  ;;  %1016 = vmatpush.bf16.msra.mxu2 %v4032_v51 }
 0x1c9   :  { %936 = vmatpush.bf16.msrb.mxu0 %v4070_v23 }
 0x1ca   :  { %1004 = vmatpush.bf16.msra.mxu1 %v4039_v60  ;;  %1017 = vmatpush.bf16.msra.mxu2 %v4041_v61 }
 0x1cd   :  { %937 = vmatpush.bf16.msrb.mxu0 %v4080_v32 }
 0x1ce   :  { %1005 = vmatpush.bf16.msra.mxu1 %v4053_v6  ;;  %1018 = vmatpush.bf16.msra.mxu2 %v4055_v8 }
 0x1d1   :  { %938 = vmatpush.bf16.msrb.mxu0 %v4090_v46 }
 0x1d2   :  { %1006 = vmatpush.bf16.msra.mxu1 %v4062_v17  ;;  %1019 = vmatpush.bf16.msra.mxu2 %v4064_v18 }
 0x1d5   :  { %939 = vmatpush.bf16.msrb.mxu0 %v4105_v54 }
 0x1d6   :  { %1007 = vmatpush.bf16.msra.mxu1 %v4076_v27  ;;  %1020 = vmatpush.bf16.msra.mxu2 %v4078_v31 }
 0x1d9   :  { %940 = vmatpush.bf16.msrb.mxu0 %v4110_v57 }
 0x1da   :  { %1008 = vmatpush.bf16.msra.mxu1 %v4083_v36  ;;  %1021 = vmatpush.bf16.msra.mxu2 %v4087_v44 }
 0x239   :  { %v728_v52 = vpop.f32.mrf.mxu0  ;;  %v741_v11 = vpop.f32.mrf.mxu1 }
 0x23a   :  { %v758_v35 = vadd.f32 %v728_v52, %v391_v42  ;;  %v778_v53 = vadd.f32 %v741_v11, %v420_v48 }
 0x23c   :  { %v2788_v5 = vmul.f32 -1.442695, %v758_v35  ;;  %v2789_v58 = vmul.f32 -1.442695, %v778_v53 }
 0x23e   :  { %3446 = vpow2.f32 %v2788_v5 }
 0x23f   :  { %3448 = vpow2.f32 %v2789_v58 }
 0x240   :  { %v754_v59 = vpop.f32.mrf.mxu2 }
 0x241   :  { %v730_v62 = vpop.f32.mrf.mxu0  ;;  %v743_v63 = vpop.f32.mrf.mxu1  ;;  %v798_v5 = vadd.f32 %v4230_v20, %v754_v59 }
 0x242   :  { %v449_v63 = vadd.f32 %v4172_v10, %v4179_v15 }
 0x244   :  { %v3447_v1 = vpop.eup %3446 }
 0x245   :  { %v3449_v29 = vpop.eup %3448  ;;  %v762_v47 = vadd.f32 1.0, %v3447_v1 }
 0x246   :  { %v782_v0 = vadd.f32 1.0, %v3449_v29 }
 0x247   :  { %3450 = vrcp.f32 %v762_v47  ;;  %v774_v55 = vand.u32 2147483648, %v762_v47  ;;  %v772_v48 = vand.u32 2147483647, %v762_v47  ;;  %vm768_vm11 = vweird.f32 %v762_v47 }
 0x248   :  { %3452 = vrcp.f32 %v782_v0  ;;  %v756_v4 = vpop.f32.mrf.mxu2  ;;  %v794_v1 = vand.u32 2147483648, %v782_v0  ;;  %vm788_vm15 = vweird.f32 %v782_v0 }
 0x249   :  { %v775_v35 = vor.u32 1.1754944e-38, %v774_v55  ;;  %vm773_vm13 = vcmp.eq.f32.partialorder %v772_v48, 8.507059e+37  ;;  %v792_v4 = vand.u32 2147483647, %v782_v0 }
 0x24b   :  { %vm793_vm2 = vcmp.eq.f32.partialorder %v792_v4, 8.507059e+37 }
 0x24d   :  { %v3451_v26 = vpop.eup %3450 }
 0x24e   :  { %v3453_v7 = vpop.eup %3452  ;;  %v764_v16 = vmul.f32 %v3451_v26, %v762_v47  ;;  %vm769_vm10 = vweird.f32 %v3451_v26  ;;  %v795_v47 = vor.u32 1.1754944e-38, %v794_v1 }
 0x24f   :  { %v784_v33 = vmul.f32 %v3453_v7, %v782_v0  ;;  %vm770_vm12 = vmor %vm768_vm11, %vm769_vm10  ;;  %vm789_vm14 = vweird.f32 %v3453_v7 }
 0x250   :  { %v765_v40 = vsub.f32 1.0, %v764_v16  ;;  %vm790_vm0 = vmor %vm788_vm15, %vm789_vm14 }
 0x251   :  { %v785_v50 = vsub.f32 1.0, %v784_v33 }
 0x252   :  { %v766_v42 = vmul.f32 %v3451_v26, %v765_v40 }
 0x253   :  { %v786_v52 = vmul.f32 %v3453_v7, %v785_v50 }
 0x254   :  { %v767_v11 = vadd.f32 %v3451_v26, %v766_v42 }
 0x255   :  { %v787_v58 = vadd.f32 %v3453_v7, %v786_v52 }
 0x256   :  { %v771_v53 = vsel %vm770_vm12, %v3451_v26, %v767_v11 }
 0x257   :  { %v776_v62 = vsel %vm773_vm13, %v775_v35, %v771_v53  ;;  %v791_v33 = vsel %vm790_vm0, %v3453_v7, %v787_v58 }
 0x258   :  { %v799_v29 = vmul.f32 %v798_v5, %v776_v62  ;;  %v796_v26 = vsel %vm793_vm2, %v795_v47, %v791_v33 }
 0x259   :  { %v802_v40 = vsub.f32 1.0, %v796_v26  ;;  %v804_v55 = vmul.f32 %v796_v26, %v4235_v3 }
 0x25a   :  { %v800_v16 = vadd.f32 %v799_v29, %v449_v63 }
 0x25c   :  { %3454 = vtanh.f32 %v800_v16 }
 0x262   :  { %v3455_v50 = vpop.eup %3454 }
 0x263   :  { %v803_v59 = vmul.f32 %v3455_v50, %v802_v40 }
 0x265   :  { %v4273_v42 = vadd.f32 %v804_v55, %v803_v59 }
 0x267   :  { %v812_v10 = vpack.c.bf16 %v4273_v42, %v4273_v42 }
 0x269   :  { %821 = vmatmul.bf16.vlgmr.msra.gmra.mxu3 %v812_v10  ;;  %834 = vmatmul.bf16.vlgmr.msra.gmra.mxu0 %v812_v10 }
 0x26a   :  { %847 = vmatmul.bf16.vlgmr.msrb.gmra.mxu1 %v812_v10  ;;  %1027 = vmatpush.bf16.msra.mxu3 %v4037_v56 }
 0x26b   :  { %1090 = vmatpush.bf16.msra.mxu0 %v4016_v37  ;;  %1103 = vmatpush.bf16.msrb.mxu1 %v4018_v39 }
 0x26e   :  { %1028 = vmatpush.bf16.msra.mxu3 %v4047_v2 }
 0x26f   :  { %1091 = vmatpush.bf16.msra.mxu0 %v4023_v43  ;;  %1104 = vmatpush.bf16.msrb.mxu1 %v4025_v45 }
 0x272   :  { %1029 = vmatpush.bf16.msra.mxu3 %v4060_v13 }
 0x273   :  { %1092 = vmatpush.bf16.msra.mxu0 %v4030_v49  ;;  %1105 = vmatpush.bf16.msrb.mxu1 %v4032_v51 }
 0x276   :  { %1030 = vmatpush.bf16.msra.mxu3 %v4070_v23 }
 0x277   :  { %1093 = vmatpush.bf16.msra.mxu0 %v4039_v60  ;;  %1106 = vmatpush.bf16.msrb.mxu1 %v4041_v61 }
 0x27a   :  { %1031 = vmatpush.bf16.msra.mxu3 %v4080_v32 }
 0x27b   :  { %1094 = vmatpush.bf16.msra.mxu0 %v4053_v6  ;;  %1107 = vmatpush.bf16.msrb.mxu1 %v4055_v8 }
 0x27e   :  { %1032 = vmatpush.bf16.msra.mxu3 %v4090_v46 }
 0x27f   :  { %1095 = vmatpush.bf16.msra.mxu0 %v4062_v17  ;;  %1108 = vmatpush.bf16.msrb.mxu1 %v4064_v18 }
 0x282   :  { %1033 = vmatpush.bf16.msra.mxu3 %v4105_v54 }
 0x283   :  { %1096 = vmatpush.bf16.msra.mxu0 %v4076_v27  ;;  %1109 = vmatpush.bf16.msrb.mxu1 %v4078_v31 }
 0x286   :  { %1034 = vmatpush.bf16.msra.mxu3 %v4110_v57 }
 0x287   :  { %1097 = vmatpush.bf16.msra.mxu0 %v4083_v36  ;;  %1110 = vmatpush.bf16.msrb.mxu1 %v4087_v44 }
 0x2e6   :  { %v835_v3 = vpop.f32.mrf.mxu0 }
 0x2e7   :  { %v872_v0 = vadd.f32 %v835_v3, %v4182_v19  ;;  %v848_v7 = vpop.f32.mrf.mxu1 }
 0x2e8   :  { %v892_v3 = vadd.f32 %v4230_v20, %v848_v7 }
 0x2e9   :  { %v2791_v48 = vmul.f32 -1.442695, %v872_v0 }
 0x2eb   :  { %3456 = vpow2.f32 %v2791_v48 }
 0x2ec   :  { %v822_v52 = vpop.f32.mrf.mxu3 }
 0x2ed   :  { %v852_v11 = vadd.f32 %v822_v52, %v4175_v12 }
 0x2ee   :  { %v837_v35 = vpop.f32.mrf.mxu0 }
 0x2ef   :  { %v2790_v53 = vmul.f32 -1.442695, %v852_v11  ;;  %v850_v5 = vpop.f32.mrf.mxu1 }
 0x2f1   :  { %v3457_v58 = vpop.eup %3456  ;;  %3458 = vpow2.f32 %v2790_v53 }
 0x2f2   :  { %v876_v62 = vadd.f32 1.0, %v3457_v58 }
 0x2f4   :  { %v824_v63 = vpop.f32.mrf.mxu3  ;;  %3460 = vrcp.f32 %v876_v62  ;;  %v888_v11 = vand.u32 2147483648, %v876_v62  ;;  %vm882_vm8 = vweird.f32 %v876_v62  ;;  %v886_v53 = vand.u32 2147483647, %v876_v62 }
 0x2f6   :  { %v889_v63 = vor.u32 1.1754944e-38, %v888_v11  ;;  %vm887_vm10 = vcmp.eq.f32.partialorder %v886_v53, 8.507059e+37 }
 0x2f7   :  { %v3459_v1 = vpop.eup %3458 }
 0x2f8   :  { %v856_v29 = vadd.f32 1.0, %v3459_v1 }
 0x2fa   :  { %3462 = vrcp.f32 %v856_v29  ;;  %v3461_v4 = vpop.eup %3460  ;;  %v868_v40 = vand.u32 2147483648, %v856_v29  ;;  %v866_v12 = vand.u32 2147483647, %v856_v29  ;;  %vm862_vm4 = vweird.f32 %v856_v29 }
 0x2fb   :  { %v878_v16 = vmul.f32 %v3461_v4, %v876_v62  ;;  %vm883_vm7 = vweird.f32 %v3461_v4 }
 0x2fc   :  { %v869_v10 = vor.u32 1.1754944e-38, %v868_v40  ;;  %vm867_vm6 = vcmp.eq.f32.partialorder %v866_v12, 8.507059e+37  ;;  %vm884_vm9 = vmor %vm882_vm8, %vm883_vm7 }
 0x2fd   :  { %v879_v47 = vsub.f32 1.0, %v878_v16 }
 0x2ff   :  { %v880_v59 = vmul.f32 %v3461_v4, %v879_v47  ;;  %v425_v47 = vadd.f32 %v4189_v24, %v4177_v14 }
 0x300   :  { %v3463_v19 = vpop.eup %3462 }
 0x301   :  { %v858_v33 = vmul.f32 %v3463_v19, %v856_v29  ;;  %vm863_vm3 = vweird.f32 %v3463_v19  ;;  %v881_v52 = vadd.f32 %v3461_v4, %v880_v59 }
 0x302   :  { %vm864_vm5 = vmor %vm862_vm4, %vm863_vm3 }
 0x303   :  { %v859_v26 = vsub.f32 1.0, %v858_v33  ;;  %v885_v58 = vsel %vm884_vm9, %v3461_v4, %v881_v52  ;;  %v396_v4 = vadd.f32 %v4187_v22, %v4170_v9 }
 0x304   :  { %v890_v1 = vsel %vm887_vm10, %v889_v63, %v885_v58 }
 0x305   :  { %v860_v50 = vmul.f32 %v3463_v19, %v859_v26  ;;  %v896_v29 = vsub.f32 1.0, %v890_v1 }
 0x307   :  { %v861_v55 = vadd.f32 %v3463_v19, %v860_v50 }
 0x309   :  { %v865_v0 = vsel %vm864_vm5, %v3463_v19, %v861_v55  ;;  %v898_v19 = vmul.f32 %v890_v1, %v4273_v42 }
 0x30a   :  { %v870_v48 = vsel %vm867_vm6, %v869_v10, %v865_v0 }
 0x30b   :  { %v893_v35 = vmul.f32 %v892_v3, %v870_v48 }
 0x30d   :  { %v894_v5 = vadd.f32 %v893_v35, %v4185_v21 }
 0x30f   :  { %3464 = vtanh.f32 %v894_v5 }
 0x315   :  { %v3465_v16 = vpop.eup %3464 }
 0x316   :  { %v897_v7 = vmul.f32 %v3465_v16, %v896_v29 }
 0x318   :  { %v4306_v33 = vadd.f32 %v898_v19, %v897_v7 }
 0x31a   :  { %901 = vrot.lane.b32.xlu2 %v4306_v33, %s3856_s18  ;;  %v906_v62 = vpack.c.bf16 %v4306_v33, %v4306_v33 }
 0x31c   :  { %915 = vmatmul.bf16.vlgmr.msrb.gmra.mxu2 %v906_v62  ;;  %928 = vmatmul.bf16.vlgmr.msrb.gmra.mxu3 %v906_v62 }
 0x31d   :  { %941 = vmatmul.bf16.vlgmr.msrb.gmra.mxu0 %v906_v62  ;;  %1116 = vmatpush.bf16.msrb.mxu2 %v4037_v56 }
 0x31e   :  { %1183 = vmatpush.bf16.msrb.mxu3 %v4016_v37  ;;  %1196 = vmatpush.bf16.msrb.mxu0 %v4018_v39 }
 0x321   :  { %1117 = vmatpush.bf16.msrb.mxu2 %v4047_v2 }
 0x322   :  { %1184 = vmatpush.bf16.msrb.mxu3 %v4023_v43  ;;  %1197 = vmatpush.bf16.msrb.mxu0 %v4025_v45 }
 0x325   :  { %1118 = vmatpush.bf16.msrb.mxu2 %v4060_v13 }
 0x326   :  { %1185 = vmatpush.bf16.msrb.mxu3 %v4030_v49  ;;  %1198 = vmatpush.bf16.msrb.mxu0 %v4032_v51 }
 0x329   :  { %1119 = vmatpush.bf16.msrb.mxu2 %v4070_v23 }
 0x32a   :  { %1186 = vmatpush.bf16.msrb.mxu3 %v4039_v60  ;;  %1199 = vmatpush.bf16.msrb.mxu0 %v4041_v61 }
 0x32d   :  { %1120 = vmatpush.bf16.msrb.mxu2 %v4080_v32 }
 0x32e   :  { %1187 = vmatpush.bf16.msrb.mxu3 %v4053_v6  ;;  %1200 = vmatpush.bf16.msrb.mxu0 %v4055_v8 }
 0x331   :  { %1121 = vmatpush.bf16.msrb.mxu2 %v4090_v46 }
 0x332   :  { %1188 = vmatpush.bf16.msrb.mxu3 %v4062_v17  ;;  %1201 = vmatpush.bf16.msrb.mxu0 %v4064_v18 }
 0x335   :  { %1122 = vmatpush.bf16.msrb.mxu2 %v4105_v54 }
 0x336   :  { %1189 = vmatpush.bf16.msrb.mxu3 %v4076_v27  ;;  %1202 = vmatpush.bf16.msrb.mxu0 %v4078_v31 }
 0x339   :  { %1123 = vmatpush.bf16.msrb.mxu2 %v4110_v57 }
 0x33a   :  { %1190 = vmatpush.bf16.msrb.mxu3 %v4083_v36  ;;  %1203 = vmatpush.bf16.msrb.mxu0 %v4087_v44 }
 0x39a   :  { %v942_v21 = vpop.f32.mrf.mxu0 }
 0x39b   :  { %v986_v19 = vadd.f32 %v4230_v20, %v942_v21 }
 0x39f   :  { %v916_v26 = vpop.f32.mrf.mxu2  ;;  %v929_v40 = vpop.f32.mrf.mxu3 }
 0x3a0   :  { %v946_v50 = vadd.f32 %v916_v26, %v396_v4  ;;  %v966_v12 = vadd.f32 %v929_v40, %v425_v47  ;;  %v454_v26 = vadd.f32 %v4191_v25, %v4179_v15 }
 0x3a2   :  { %v2792_v59 = vmul.f32 -1.442695, %v946_v50  ;;  %v2793_v55 = vmul.f32 -1.442695, %v966_v12  ;;  %v944_v10 = vpop.f32.mrf.mxu0 }
 0x3a4   :  { %3466 = vpow2.f32 %v2792_v59 }
 0x3a5   :  { %3468 = vpow2.f32 %v2793_v55 }
 0x3a7   :  { %v918_v3 = vpop.f32.mrf.mxu2  ;;  %v931_v0 = vpop.f32.mrf.mxu3 }
 0x3aa   :  { %v3467_v48 = vpop.eup %3466 }
 0x3ab   :  { %v3469_v52 = vpop.eup %3468  ;;  %v950_v11 = vadd.f32 1.0, %v3467_v48 }
 0x3ac   :  { %v970_v35 = vadd.f32 1.0, %v3469_v52 }
 0x3ad   :  { %3470 = vrcp.f32 %v950_v11  ;;  %v962_v5 = vand.u32 2147483648, %v950_v11  ;;  %v960_v1 = vand.u32 2147483647, %v950_v11  ;;  %vm956_vm12 = vweird.f32 %v950_v11 }
 0x3ae   :  { %3472 = vrcp.f32 %v970_v35  ;;  %v982_v40 = vand.u32 2147483648, %v970_v35  ;;  %vm976_vm0 = vweird.f32 %v970_v35  ;;  %v980_v12 = vand.u32 2147483647, %v970_v35 }
 0x3af   :  { %v963_v7 = vor.u32 1.1754944e-38, %v962_v5  ;;  %vm961_vm14 = vcmp.eq.f32.partialorder %v960_v1, 8.507059e+37 }
 0x3b0   :  { %v983_v10 = vor.u32 1.1754944e-38, %v982_v40  ;;  %vm981_vm3 = vcmp.eq.f32.partialorder %v980_v12, 8.507059e+37 }
 0x3b3   :  { %v3471_v9 = vpop.eup %3470 }
 0x3b4   :  { %v3473_v22 = vpop.eup %3472  ;;  %v952_v14 = vmul.f32 %v3471_v9, %v950_v11  ;;  %vm957_vm11 = vweird.f32 %v3471_v9 }
 0x3b5   :  { %v972_v24 = vmul.f32 %v3473_v22, %v970_v35  ;;  %vm958_vm13 = vmor %vm956_vm12, %vm957_vm11  ;;  %vm977_vm15 = vweird.f32 %v3473_v22 }
 0x3b6   :  { %v953_v53 = vsub.f32 1.0, %v952_v14  ;;  %vm978_vm2 = vmor %vm976_vm0, %vm977_vm15 }
 0x3b7   :  { %v973_v58 = vsub.f32 1.0, %v972_v24 }
 0x3b8   :  { %v954_v63 = vmul.f32 %v3471_v9, %v953_v53 }
 0x3b9   :  { %v974_v29 = vmul.f32 %v3473_v22, %v973_v58 }
 0x3ba   :  { %v955_v16 = vadd.f32 %v3471_v9, %v954_v63 }
 0x3bb   :  { %v975_v47 = vadd.f32 %v3473_v22, %v974_v29 }
 0x3bc   :  { %v959_v62 = vsel %vm958_vm13, %v3471_v9, %v955_v16 }
 0x3bd   :  { %v964_v4 = vsel %vm961_vm14, %v963_v7, %v959_v62  ;;  %v979_v55 = vsel %vm978_vm2, %v3473_v22, %v975_v47 }
 0x3be   :  { %v987_v50 = vmul.f32 %v986_v19, %v964_v4  ;;  %v984_v3 = vsel %vm981_vm3, %v983_v10, %v979_v55 }
 0x3bf   :  { %v990_v21 = vsub.f32 1.0, %v984_v3  ;;  %v992_v52 = vmul.f32 %v984_v3, %v4306_v33 }
 0x3c0   :  { %v988_v59 = vadd.f32 %v987_v50, %v454_v26 }
 0x3c2   :  { %3474 = vtanh.f32 %v988_v59 }
 0x3c8   :  { %v3475_v0 = vpop.eup %3474 }
 0x3c9   :  { %v991_v48 = vmul.f32 %v3475_v0, %v990_v21 }
 0x3cb   :  { %v4344_v11 = vadd.f32 %v992_v52, %v991_v48 }
 0x3cd   :  { %995 = vrot.lane.b32.xlu2 %v4344_v11, %s3874_s13  ;;  %v1000_v25 = vpack.c.bf16 %v4344_v11, %v4344_v11 }
 0x3cf   :  { %1009 = vmatmul.bf16.vlgmr.msra.gmra.mxu1 %v1000_v25  ;;  %1022 = vmatmul.bf16.vlgmr.msra.gmra.mxu2 %v1000_v25 }
 0x3d0   :  { %1035 = vmatmul.bf16.vlgmr.msra.gmra.mxu3 %v1000_v25  ;;  %1209 = vmatpush.bf16.msra.mxu1 %v4037_v56 }
 0x3d1   :  { %1276 = vmatpush.bf16.msra.mxu2 %v4016_v37  ;;  %1289 = vmatpush.bf16.msra.mxu3 %v4018_v39 }
 0x3d4   :  { %1210 = vmatpush.bf16.msra.mxu1 %v4047_v2 }
 0x3d5   :  { %1277 = vmatpush.bf16.msra.mxu2 %v4023_v43  ;;  %1290 = vmatpush.bf16.msra.mxu3 %v4025_v45 }
 0x3d8   :  { %1211 = vmatpush.bf16.msra.mxu1 %v4060_v13 }
 0x3d9   :  { %1278 = vmatpush.bf16.msra.mxu2 %v4030_v49  ;;  %1291 = vmatpush.bf16.msra.mxu3 %v4032_v51 }
 0x3dc   :  { %1212 = vmatpush.bf16.msra.mxu1 %v4070_v23 }
 0x3dd   :  { %1279 = vmatpush.bf16.msra.mxu2 %v4039_v60  ;;  %1292 = vmatpush.bf16.msra.mxu3 %v4041_v61 }
 0x3e0   :  { %1213 = vmatpush.bf16.msra.mxu1 %v4080_v32 }
 0x3e1   :  { %1280 = vmatpush.bf16.msra.mxu2 %v4053_v6  ;;  %1293 = vmatpush.bf16.msra.mxu3 %v4055_v8 }
 0x3e4   :  { %1214 = vmatpush.bf16.msra.mxu1 %v4090_v46 }
 0x3e5   :  { %1281 = vmatpush.bf16.msra.mxu2 %v4062_v17  ;;  %1294 = vmatpush.bf16.msra.mxu3 %v4064_v18 }
 0x3e8   :  { %1215 = vmatpush.bf16.msra.mxu1 %v4105_v54 }
 0x3e9   :  { %1282 = vmatpush.bf16.msra.mxu2 %v4076_v27  ;;  %1295 = vmatpush.bf16.msra.mxu3 %v4078_v31 }
 0x3ec   :  { %1216 = vmatpush.bf16.msra.mxu1 %v4110_v57 }
 0x3ed   :  { %1283 = vmatpush.bf16.msra.mxu2 %v4083_v36  ;;  %1296 = vmatpush.bf16.msra.mxu3 %v4087_v44 }
 0x44c   :  { %v1010_v37 = vpop.f32.mrf.mxu1 }
 0x44d   :  { %v1040_v39 = vadd.f32 %v1010_v37, %v4194_v28 }
 0x44f   :  { %v2794_v43 = vmul.f32 -1.442695, %v1040_v39 }
 0x451   :  { %3476 = vpow2.f32 %v2794_v43 }
 0x452   :  { %v1023_v45 = vpop.f32.mrf.mxu2 }
 0x453   :  { %v1060_v49 = vadd.f32 %v1023_v45, %v4197_v30  ;;  %v1036_v51 = vpop.f32.mrf.mxu3 }
 0x454   :  { %v1012_v60 = vpop.f32.mrf.mxu1  ;;  %v1080_v58 = vadd.f32 %v4230_v20, %v1036_v51 }
 0x455   :  { %v2795_v61 = vmul.f32 -1.442695, %v1060_v49 }
 0x457   :  { %v3477_v6 = vpop.eup %3476  ;;  %3478 = vpow2.f32 %v2795_v61 }
 0x458   :  { %v1044_v8 = vadd.f32 1.0, %v3477_v6 }
 0x45a   :  { %3480 = vrcp.f32 %v1044_v8  ;;  %v1025_v17 = vpop.f32.mrf.mxu2  ;;  %v1056_v33 = vand.u32 2147483648, %v1044_v8  ;;  %v1054_v9 = vand.u32 2147483647, %v1044_v8  ;;  %vm1050_vm5 = vweird.f32 %v1044_v8 }
 0x45b   :  { %v1038_v18 = vpop.f32.mrf.mxu3 }
 0x45c   :  { %v1057_v24 = vor.u32 1.1754944e-38, %v1056_v33  ;;  %vm1055_vm7 = vcmp.eq.f32.partialorder %v1054_v9, 8.507059e+37 }
 0x45d   :  { %v3479_v27 = vpop.eup %3478 }
 0x45e   :  { %v1064_v31 = vadd.f32 1.0, %v3479_v27  ;;  %v4521_v27 = vld [vmem:[#allocation32_spill] sm:$0xff] }
 0x460   :  { %v3481_v36 = vpop.eup %3480  ;;  %3482 = vrcp.f32 %v1064_v31  ;;  %v1076_v29 = vand.u32 2147483648, %v1064_v31  ;;  %v1074_v7 = vand.u32 2147483647, %v1064_v31  ;;  %vm1070_vm9 = vweird.f32 %v1064_v31 }
 0x461   :  { %v1046_v44 = vmul.f32 %v3481_v36, %v1044_v8  ;;  %vm1051_vm4 = vweird.f32 %v3481_v36 }
 0x462   :  { %vm1052_vm6 = vmor %vm1050_vm5, %vm1051_vm4  ;;  %v1077_v4 = vor.u32 1.1754944e-38, %v1076_v29  ;;  %vm1075_vm11 = vcmp.eq.f32.partialorder %v1074_v7, 8.507059e+37  ;;  %vm810_vm5 = vcmask 523520  }
 0x463   :  { %v1047_v28 = vsub.f32 1.0, %v1046_v44 }
 0x465   :  { %v1048_v35 = vmul.f32 %v3481_v36, %v1047_v28 }
 0x466   :  { %v3483_v30 = vpop.eup %3482 }
 0x467   :  { %v1066_v22 = vmul.f32 %v3483_v30, %v1064_v31  ;;  %v1049_v14 = vadd.f32 %v3481_v36, %v1048_v35  ;;  %vm1071_vm8 = vweird.f32 %v3483_v30  ;;  %v459_v31 = vadd.f32 %v4521_v27, %v4179_v15 }
 0x468   :  { %vm1072_vm10 = vmor %vm1070_vm9, %vm1071_vm8 }
 0x469   :  { %v1067_v53 = vsub.f32 1.0, %v1066_v22  ;;  %v1053_v5 = vsel %vm1052_vm6, %v3481_v36, %v1049_v14 }
 0x46a   :  { %v1058_v63 = vsel %vm1055_vm7, %v1057_v24, %v1053_v5 }
 0x46b   :  { %v1068_v1 = vmul.f32 %v3483_v30, %v1067_v53  ;;  %v1081_v16 = vmul.f32 %v1080_v58, %v1058_v63 }
 0x46d   :  { %v1069_v19 = vadd.f32 %v3483_v30, %v1068_v1  ;;  %v1082_v62 = vadd.f32 %v1081_v16, %v4200_v34  ;;  %v4522_v1 = vld [vmem:[#allocation34_spill] sm:$0xff] }
 0x46f   :  { %v1073_v47 = vsel %vm1072_vm10, %v3483_v30, %v1069_v19  ;;  %3484 = vtanh.f32 %v1082_v62  ;;  %v4523_v62 = vld [vmem:[#allocation33_spill] sm:$0xff] }
 0x470   :  { %v1078_v26 = vsel %vm1075_vm11, %v1077_v4, %v1073_v47 }
 0x471   :  { %v1084_v40 = vsub.f32 1.0, %v1078_v26  ;;  %v1086_v59 = vmul.f32 %v1078_v26, %v4344_v11 }
 0x475   :  { %v3485_v50 = vpop.eup %3484 }
 0x476   :  { %v1085_v12 = vmul.f32 %v3485_v50, %v1084_v40 }
 0x478   :  { %v4379_v55 = vadd.f32 %v1086_v59, %v1085_v12 }
 0x47a   :  { %v1089_v10 = vpack.c.bf16 %v4379_v55, %v4379_v55  ;;  %1088 = vst.msk [vmem:[#allocation2 + $0x8] sm:$0xff] %vm366_vm1, %v4379_v55 }
 0x47c   :  { %1098 = vmatmul.bf16.vlgmr.msra.gmra.mxu0 %v1089_v10  ;;  %1111 = vmatmul.bf16.vlgmr.msrb.gmra.mxu1 %v1089_v10 }
 0x47d   :  { %1124 = vmatmul.bf16.vlgmr.msrb.gmra.mxu2 %v1089_v10  ;;  %1302 = vmatpush.bf16.msra.mxu0 %v4037_v56 }
 0x481   :  { %1303 = vmatpush.bf16.msra.mxu0 %v4047_v2 }
 0x485   :  { %1304 = vmatpush.bf16.msra.mxu0 %v4060_v13 }
 0x489   :  { %1305 = vmatpush.bf16.msra.mxu0 %v4070_v23 }
 0x48d   :  { %1306 = vmatpush.bf16.msra.mxu0 %v4080_v32 }
 0x491   :  { %1307 = vmatpush.bf16.msra.mxu0 %v4090_v46 }
 0x495   :  { %1308 = vmatpush.bf16.msra.mxu0 %v4105_v54 }
 0x499   :  { %1309 = vmatpush.bf16.msra.mxu0 %v4110_v57 }
 0x4f9   :  { %v1099_v34 = vpop.f32.mrf.mxu0  ;;  %v1112_v3 = vpop.f32.mrf.mxu1 }
 0x4fa   :  { %v1129_v21 = vadd.f32 %v1099_v34, %v4203_v38  ;;  %v1149_v56 = vadd.f32 %v1112_v3, %v4206_v41 }
 0x4fc   :  { %v2796_v0 = vmul.f32 -1.442695, %v1129_v21  ;;  %v2797_v2 = vmul.f32 -1.442695, %v1149_v56 }
 0x4fe   :  { %3486 = vpow2.f32 %v2796_v0 }
 0x4ff   :  { %3488 = vpow2.f32 %v2797_v2 }
 0x500   :  { %v1125_v13 = vpop.f32.mrf.mxu2 }
 0x501   :  { %v1101_v23 = vpop.f32.mrf.mxu0  ;;  %v1114_v48 = vpop.f32.mrf.mxu1  ;;  %v1169_v8 = vadd.f32 %v4230_v20, %v1125_v13 }
 0x504   :  { %v3487_v32 = vpop.eup %3486 }
 0x505   :  { %v3489_v52 = vpop.eup %3488  ;;  %v1133_v46 = vadd.f32 1.0, %v3487_v32 }
 0x506   :  { %v1153_v11 = vadd.f32 1.0, %v3489_v52 }
 0x507   :  { %3490 = vrcp.f32 %v1133_v46  ;;  %v1145_v43 = vand.u32 2147483648, %v1133_v46  ;;  %v1143_v49 = vand.u32 2147483647, %v1133_v46  ;;  %vm1139_vm13 = vweird.f32 %v1133_v46 }
 0x508   :  { %3492 = vrcp.f32 %v1153_v11  ;;  %v1127_v54 = vpop.f32.mrf.mxu2  ;;  %v1165_v44 = vand.u32 2147483648, %v1153_v11  ;;  %vm1159_vm2 = vweird.f32 %v1153_v11  ;;  %v1163_v28 = vand.u32 2147483647, %v1153_v11 }
 0x509   :  { %v1146_v61 = vor.u32 1.1754944e-38, %v1145_v43  ;;  %vm1144_vm15 = vcmp.eq.f32.partialorder %v1143_v49, 8.507059e+37 }
 0x50a   :  { %v1166_v9 = vor.u32 1.1754944e-38, %v1165_v44  ;;  %vm1164_vm4 = vcmp.eq.f32.partialorder %v1163_v28, 8.507059e+37  ;;  %v4525_v44 = vld [vmem:[#allocation36_spill] sm:$0xff] }
 0x50d   :  { %v3491_v57 = vpop.eup %3490 }
 0x50e   :  { %v3493_v25 = vpop.eup %3492  ;;  %v1135_v37 = vmul.f32 %v3491_v57, %v1133_v46  ;;  %vm1140_vm12 = vweird.f32 %v3491_v57 }
 0x50f   :  { %v1155_v38 = vmul.f32 %v3493_v25, %v1153_v11  ;;  %vm1141_vm14 = vmor %vm1139_vm13, %vm1140_vm12  ;;  %vm1160_vm0 = vweird.f32 %v3493_v25 }
 0x510   :  { %v1136_v39 = vsub.f32 1.0, %v1135_v37  ;;  %vm1161_vm3 = vmor %vm1159_vm2, %vm1160_vm0 }
 0x511   :  { %v1156_v41 = vsub.f32 1.0, %v1155_v38 }
 0x512   :  { %v1137_v45 = vmul.f32 %v3491_v57, %v1136_v39 }
 0x513   :  { %v1157_v51 = vmul.f32 %v3493_v25, %v1156_v41  ;;  %v4524_v41 = vld [vmem:[#allocation35_spill] sm:$0xff] }
 0x514   :  { %v1138_v60 = vadd.f32 %v3491_v57, %v1137_v45 }
 0x515   :  { %v1158_v18 = vadd.f32 %v3493_v25, %v1157_v51 }
 0x516   :  { %v1142_v6 = vsel %vm1141_vm14, %v3491_v57, %v1138_v60  ;;  %vm904_vm14 = vcmask 785920  }
 0x517   :  { %v1147_v17 = vsel %vm1144_vm15, %v1146_v61, %v1142_v6  ;;  %v1162_v35 = vsel %vm1161_vm3, %v3493_v25, %v1158_v18 }
 0x518   :  { %v1170_v36 = vmul.f32 %v1169_v8, %v1147_v17  ;;  %v1167_v30 = vsel %vm1164_vm4, %v1166_v9, %v1162_v35 }
 0x519   :  { %v1173_v22 = vsub.f32 1.0, %v1167_v30  ;;  %v1175_v53 = vmul.f32 %v1167_v30, %v4379_v55 }
 0x51a   :  { %v1171_v33 = vadd.f32 %v1170_v36, %v459_v31 }
 0x51c   :  { %3494 = vtanh.f32 %v1171_v33  ;;  %v4526_v33 = vld [vmem:[#allocation37_spill] sm:$0xff] }
 0x522   :  { %v3495_v14 = vpop.eup %3494 }
 0x523   :  { %v1174_v24 = vmul.f32 %v3495_v14, %v1173_v22 }
 0x525   :  { %v4399_v5 = vadd.f32 %v1175_v53, %v1174_v24 }
 0x527   :  { %1178 = vrot.lane.b32.xlu0 %v4399_v5, %s3875_s19  ;;  %v1182_v15 = vpack.c.bf16 %v4399_v5, %v4399_v5 }
 0x529   :  { %1191 = vmatmul.bf16.vlgmr.msrb.gmra.mxu3 %v1182_v15  ;;  %1204 = vmatmul.bf16.vlgmr.msrb.gmra.mxu0 %v1182_v15 }
 0x52a   :  { %1217 = vmatmul.bf16.vlgmr.msra.gmra.mxu1 %v1182_v15 }
 0x599   :  { %v1179_v58 = vpop.permute.xlu0 %1178 }
 0x59a   :  { %1181 = vst.msk [vmem:[#allocation2 + $0x8] sm:$0xff] %vm810_vm5, %v1179_v58 }
 0x5a6   :  { %v1205_v63 = vpop.f32.mrf.mxu0 }
 0x5a7   :  { %v1242_v29 = vadd.f32 %v1205_v63, %v4522_v1  ;;  %v1218_v16 = vpop.f32.mrf.mxu1 }
 0x5a8   :  { %v1262_v11 = vadd.f32 %v4230_v20, %v1218_v16 }
 0x5a9   :  { %v2799_v7 = vmul.f32 -1.442695, %v1242_v29 }
 0x5ab   :  { %3496 = vpow2.f32 %v2799_v7  ;;  %v3313_v7 = vld [vmem:[#allocation14 + $0x78] sm:$0xff] }
 0x5ac   :  { %v1192_v19 = vpop.f32.mrf.mxu3  ;;  %1513 = vmatpush.bf16.msrb.mxu2 %v3313_v7  ;;  %v3026_v7 = vld [vmem:[#allocation18 + $0x78] sm:$0xf] }
 0x5ad   :  { %v1222_v4 = vadd.f32 %v1192_v19, %v4523_v62  ;;  %v3305_v62 = vld [vmem:[#allocation14 + $0x38] sm:$0xff] }
 0x5ae   :  { %v1207_v47 = vpop.f32.mrf.mxu0  ;;  %1500 = vmatpush.bf16.msrb.mxu1 %v3305_v62 }
 0x5af   :  { %v2798_v26 = vmul.f32 -1.442695, %v1222_v4  ;;  %v1220_v40 = vpop.f32.mrf.mxu1 }
 0x5b1   :  { %v3497_v50 = vpop.eup %3496  ;;  %3498 = vpow2.f32 %v2798_v26  ;;  %v3312_v26 = vld [vmem:[#allocation14 + $0x70] sm:$0xff] }
 0x5b2   :  { %v1246_v12 = vadd.f32 1.0, %v3497_v50  ;;  %1514 = vmatpush.bf16.msrb.mxu2 %v3312_v26 }
 0x5b4   :  { %v1194_v59 = vpop.f32.mrf.mxu3  ;;  %3500 = vrcp.f32 %v1246_v12  ;;  %v1258_v37 = vand.u32 2147483648, %v1246_v12  ;;  %vm1252_vm11 = vweird.f32 %v1246_v12  ;;  %v1256_v39 = vand.u32 2147483647, %v1246_v12 }
 0x5b6   :  { %v1259_v49 = vor.u32 1.1754944e-38, %v1258_v37  ;;  %vm1257_vm13 = vcmp.eq.f32.partialorder %v1256_v39, 8.507059e+37  ;;  %v3308_v39 = vld [vmem:[#allocation14 + $0x50] sm:$0xff] }
 0x5b7   :  { %v3499_v55 = vpop.eup %3498 }
 0x5b8   :  { %v1226_v10 = vadd.f32 1.0, %v3499_v55 }
 0x5ba   :  { %3502 = vrcp.f32 %v1226_v10  ;;  %v3501_v34 = vpop.eup %3500  ;;  %v1238_v13 = vand.u32 2147483648, %v1226_v10  ;;  %v1236_v48 = vand.u32 2147483647, %v1226_v10  ;;  %vm1232_vm7 = vweird.f32 %v1226_v10 }
 0x5bb   :  { %v1248_v3 = vmul.f32 %v3501_v34, %v1246_v12  ;;  %vm1253_vm10 = vweird.f32 %v3501_v34  ;;  %v3304_v12 = vld [vmem:[#allocation14 + $0x30] sm:$0xff] }
 0x5bc   :  { %v1239_v46 = vor.u32 1.1754944e-38, %v1238_v13  ;;  %vm1237_vm9 = vcmp.eq.f32.partialorder %v1236_v48, 8.507059e+37  ;;  %vm1254_vm12 = vmor %vm1252_vm11, %vm1253_vm10  ;;  %1501 = vmatpush.bf16.msrb.mxu1 %v3304_v12  ;;  %vm1640_vm10 = vcmask 1043456  }
 0x5bd   :  { %v1249_v0 = vsub.f32 1.0, %v1248_v3  ;;  %v3526_v3 = vld [vmem:[#allocation12] ss:$0 sm:$0xff] }
 0x5bf   :  { %v1250_v32 = vmul.f32 %v3501_v34, %v1249_v0  ;;  %v3303_v0 = vld [vmem:[#allocation14 + $0x28] sm:$0xff] }
 0x5c0   :  { %v3503_v21 = vpop.eup %3502  ;;  %1502 = vmatpush.bf16.msrb.mxu1 %v3303_v0  ;;  %v3339_v0 = vld [vmem:[#allocation18 + $0x8] sm:$0xf0] }
 0x5c1   :  { %v1228_v56 = vmul.f32 %v3503_v21, %v1226_v10  ;;  %vm1233_vm6 = vweird.f32 %v3503_v21  ;;  %v1251_v25 = vadd.f32 %v3501_v34, %v1250_v32 }
 0x5c2   :  { %vm1234_vm8 = vmor %vm1232_vm7, %vm1233_vm6 }
 0x5c3   :  { %v1229_v2 = vsub.f32 1.0, %v1228_v56  ;;  %v1255_v45 = vsel %vm1254_vm12, %v3501_v34, %v1251_v25  ;;  %v3311_v34 = vld [vmem:[#allocation14 + $0x68] sm:$0xff]  ;;  %v3309_v25 = vld [vmem:[#allocation14 + $0x58] sm:$0xff] }
 0x5c4   :  { %v1260_v51 = vsel %vm1257_vm13, %v1259_v49, %v1255_v45  ;;  %1515 = vmatpush.bf16.msrb.mxu2 %v3311_v34  ;;  %v2978_v34 = vld [vmem:[#allocation18 + $0x18] sm:$0xf] }
 0x5c5   :  { %v1230_v23 = vmul.f32 %v3503_v21, %v1229_v2  ;;  %v1266_v60 = vsub.f32 1.0, %v1260_v51  ;;  %v1268_v6 = vmul.f32 %v1260_v51, %v4399_v5  ;;  %v3302_v51 = vld [vmem:[#allocation14 + $0x20] sm:$0xff] }
 0x5c6   :  { %1503 = vmatpush.bf16.msrb.mxu1 %v3302_v51  ;;  %v3352_v51 = vld [vmem:[#allocation18 + $0x70] sm:$0xf0] }
 0x5c7   :  { %v1231_v52 = vadd.f32 %v3503_v21, %v1230_v23 }
 0x5c9   :  { %v1235_v54 = vsel %vm1234_vm8, %v3503_v21, %v1231_v52  ;;  %v3310_v52 = vld [vmem:[#allocation14 + $0x60] sm:$0xff] }
 0x5ca   :  { %v1240_v57 = vsel %vm1237_vm9, %v1239_v46, %v1235_v54  ;;  %v4527_v46 = vld [vmem:[#allocation38_spill] sm:$0xff]  ;;  %1516 = vmatpush.bf16.msrb.mxu2 %v3310_v52  ;;  %vm998_vm9 = vcmask 1048320  }
 0x5cb   :  { %v1263_v38 = vmul.f32 %v1262_v11, %v1240_v57  ;;  %v3058_v52 = vld [vmem:[#allocation18 + $0xb0] sm:$0xf] }
 0x5cd   :  { %v1264_v43 = vadd.f32 %v1263_v38, %v4524_v41 }
 0x5ce   :  { %1517 = vmatpush.bf16.msrb.mxu2 %v3309_v25 }
 0x5cf   :  { %3504 = vtanh.f32 %v1264_v43 }
 0x5d2   :  { %1518 = vmatpush.bf16.msrb.mxu2 %v3308_v39 }
 0x5d5   :  { %v3505_v61 = vpop.eup %3504 }
 0x5d6   :  { %v1267_v20 = vmul.f32 %v3505_v61, %v1266_v60  ;;  %v3307_v60 = vld [vmem:[#allocation14 + $0x48] sm:$0xff]  ;;  %v3301_v61 = vld [vmem:[#allocation14 + $0x18] sm:$0xff] }
 0x5d7   :  { %1519 = vmatpush.bf16.msrb.mxu2 %v3307_v60  ;;  %1504 = vmatpush.bf16.msrb.mxu1 %v3301_v61  ;;  %v3010_v61 = vld [vmem:[#allocation18 + $0x50] sm:$0xf] }
 0x5d8   :  { %v4411_v8 = vadd.f32 %v1268_v6, %v1267_v20  ;;  %v3306_v20 = vld [vmem:[#allocation14 + $0x40] sm:$0xff]  ;;  %v3300_v6 = vld [vmem:[#allocation14 + $0x10] sm:$0xff] }
 0x5da   :  { %1271 = vrot.lane.b32.xlu0 %v4411_v8, %s3856_s18  ;;  %v1275_v17 = vpack.c.bf16 %v4411_v8, %v4411_v8 }
 0x5db   :  { %1520 = vmatpush.bf16.msrb.mxu2 %v3306_v20  ;;  %1505 = vmatpush.bf16.msrb.mxu1 %v3300_v6  ;;  %v3349_v20 = vld [vmem:[#allocation18 + $0x58] sm:$0xf0] }
 0x5dc   :  { %1284 = vmatmul.bf16.vlgmr.msra.gmra.mxu2 %v1275_v17  ;;  %1297 = vmatmul.bf16.vlgmr.msra.gmra.mxu3 %v1275_v17  ;;  %v3011_v6 = vor.u32 %v3349_v20, %v3010_v61  ;;  %v3369_v61 = vld [vmem:[#allocation18 + $0xf8] sm:$0xf0] }
 0x5dd   :  { %1310 = vmatmul.bf16.vlgmr.msra.gmra.mxu0 %v1275_v17  ;;  %v3299_v17 = vld [vmem:[#allocation14 + $0x8] sm:$0xff] }
 0x5df   :  { %1506 = vmatpush.bf16.msrb.mxu1 %v3299_v17  ;;  %v2998_v17 = vld [vmem:[#allocation18 + $0x38] sm:$0xf] }
 0x64c   :  { %v1272_v18 = vpop.permute.xlu0 %1271 }
 0x64d   :  { %1274 = vst.msk [vmem:[#allocation2 + $0x8] sm:$0xff] %vm904_vm14, %v1272_v18  ;;  %v3321_v18 = vld [vmem:[#allocation15 + $0x38] sm:$0xff] }
 0x64e   :  { %1592 = vmatpush.bf16.msrb.mxu3 %v3321_v18 }
 0x65a   :  { %v1311_v27 = vpop.f32.mrf.mxu0 }
 0x65b   :  { %v1355_v21 = vadd.f32 %v3526_v3, %v1311_v27  ;;  %v3320_v27 = vld [vmem:[#allocation15 + $0x30] sm:$0xff]  ;;  %v3342_v3 = vld [vmem:[#allocation18 + $0x20] sm:$0xf0] }
 0x65c   :  { %1593 = vmatpush.bf16.msrb.mxu3 %v3320_v27  ;;  %v2986_v27 = vld [vmem:[#allocation18 + $0x20] sm:$0xf] }
 0x65f   :  { %v1285_v31 = vpop.f32.mrf.mxu2  ;;  %v1298_v36 = vpop.f32.mrf.mxu3 }
 0x660   :  { %v1315_v28 = vadd.f32 %v1285_v31, %v4525_v44  ;;  %v1335_v35 = vadd.f32 %v1298_v36, %v4526_v33  ;;  %v3319_v31 = vld [vmem:[#allocation15 + $0x28] sm:$0xff]  ;;  %v902_v44 = vpop.permute.xlu2 %901  ;;  %v3316_v33 = vld [vmem:[#allocation15 + $0x10] sm:$0xff] }
 0x661   :  { %1594 = vmatpush.bf16.msrb.mxu3 %v3319_v31  ;;  %v3343_v31 = vld [vmem:[#allocation18 + $0x28] sm:$0xf0] }
 0x662   :  { %v2800_v9 = vmul.f32 -1.442695, %v1315_v28  ;;  %v2801_v30 = vmul.f32 -1.442695, %v1335_v35  ;;  %v1313_v22 = vpop.f32.mrf.mxu0  ;;  %v3317_v28 = vld [vmem:[#allocation15 + $0x18] sm:$0xff] }
 0x664   :  { %3506 = vpow2.f32 %v2800_v9 }
 0x665   :  { %3508 = vpow2.f32 %v2801_v30 }
 0x667   :  { %v1287_v14 = vpop.f32.mrf.mxu2  ;;  %v1300_v24 = vpop.f32.mrf.mxu3 }
 0x668   :  { %v996_v22 = vpop.permute.xlu2 %995  ;;  %v3315_v14 = vld [vmem:[#allocation15 + $0x8] sm:$0xff] }
 0x669   :  { %v3050_v24 = vld [vmem:[#allocation18 + $0xa8] sm:$0xf] }
 0x66a   :  { %v3507_v53 = vpop.eup %3506 }
 0x66b   :  { %v3509_v5 = vpop.eup %3508  ;;  %v1319_v15 = vadd.f32 1.0, %v3507_v53  ;;  %v3360_v53 = vld [vmem:[#allocation18 + $0xb0] sm:$0xf0] }
 0x66c   :  { %v1339_v58 = vadd.f32 1.0, %v3509_v5  ;;  %v3314_v5 = vld [vmem:[#allocation15] sm:$0xff] }
 0x66d   :  { %3510 = vrcp.f32 %v1319_v15  ;;  %v1331_v4 = vand.u32 2147483648, %v1319_v15  ;;  %v1329_v50 = vand.u32 2147483647, %v1319_v15  ;;  %vm1325_vm0 = vweird.f32 %v1319_v15 }
 0x66e   :  { %3512 = vrcp.f32 %v1339_v58  ;;  %v1351_v23 = vand.u32 2147483648, %v1339_v58  ;;  %vm1345_vm6 = vweird.f32 %v1339_v58  ;;  %v1349_v32 = vand.u32 2147483647, %v1339_v58 }
 0x66f   :  { %v1332_v10 = vor.u32 1.1754944e-38, %v1331_v4  ;;  %vm1330_vm3 = vcmp.eq.f32.partialorder %v1329_v50, 8.507059e+37  ;;  %v3014_v4 = vld [vmem:[#allocation18 + $0x60] sm:$0xf]  ;;  %v3348_v50 = vld [vmem:[#allocation18 + $0x50] sm:$0xf0] }
 0x670   :  { %v1352_v57 = vor.u32 1.1754944e-38, %v1351_v23  ;;  %vm1350_vm8 = vcmp.eq.f32.partialorder %v1349_v32, 8.507059e+37 }
 0x673   :  { %v3511_v63 = vpop.eup %3510 }
 0x674   :  { %v3513_v1 = vpop.eup %3512  ;;  %v1321_v29 = vmul.f32 %v3511_v63, %v1319_v15  ;;  %vm1326_vm15 = vweird.f32 %v3511_v63  ;;  %v3051_v15 = vor.u32 %v3360_v53, %v3050_v24 }
 0x675   :  { %v1341_v16 = vmul.f32 %v3513_v1, %v1339_v58  ;;  %vm1327_vm2 = vmor %vm1325_vm0, %vm1326_vm15  ;;  %vm1346_vm4 = vweird.f32 %v3513_v1  ;;  %v3038_v58 = vld [vmem:[#allocation18 + $0x90] sm:$0xf]  ;;  %vm2427_vm15 = vcmask 916480   ;;  %vm2535_vm0 = vcmask 1042432  }
 0x676   :  { %v1322_v19 = vsub.f32 1.0, %v1321_v29  ;;  %vm1347_vm7 = vmor %vm1345_vm6, %vm1346_vm4 }
 0x677   :  { %v1342_v47 = vsub.f32 1.0, %v1341_v16 }
 0x678   :  { %v1323_v40 = vmul.f32 %v3511_v63, %v1322_v19  ;;  %v3354_v19 = vld [vmem:[#allocation18 + $0x80] sm:$0xf0] }
 0x679   :  { %v1343_v59 = vmul.f32 %v3513_v1, %v1342_v47  ;;  %v3027_v62 = vor.u32 %v3354_v19, %v3026_v7  ;;  %v3351_v47 = vld [vmem:[#allocation18 + $0x68] sm:$0xf0]  ;;  %v1631_v19 = vld [vmem:[%s4507_s8] sm:$0xff] }
 0x67a   :  { %v1324_v55 = vadd.f32 %v3511_v63, %v1323_v40  ;;  %v3015_v26 = vor.u32 %v3351_v47, %v3014_v4  ;;  %v3002_v40 = vld [vmem:[#allocation18 + $0x48] sm:$0xf]  ;;  %v1634_v47 = vunpack.c.h.b16 %v1631_v19 }
 0x67b   :  { %v1344_v13 = vadd.f32 %v3513_v1, %v1343_v59  ;;  %v3003_v12 = vor.u32 %v3348_v50, %v3002_v40  ;;  %v2990_v59 = vld [vmem:[#allocation18 + $0x30] sm:$0xf] }
 0x67c   :  { %v1328_v56 = vsel %vm1327_vm2, %v3511_v63, %v1324_v55  ;;  %v3357_v63 = vld [vmem:[#allocation18 + $0x98] sm:$0xf0]  ;;  %v1636_v40 = vpack.c.b16 %v1634_v47, %v1634_v47 }
 0x67d   :  { %v1333_v2 = vsel %vm1330_vm3, %v1332_v10, %v1328_v56  ;;  %v1348_v54 = vsel %vm1347_vm7, %v3513_v1, %v1344_v13  ;;  %v3039_v16 = vor.u32 %v3357_v63, %v3038_v58  ;;  %v3345_v55 = vld [vmem:[#allocation18 + $0x38] sm:$0xf0]  ;;  %v2966_v56 = vld [vmem:[#allocation18] sm:$0xf] }
 0x67e   :  { %v1356_v48 = vmul.f32 %v1355_v21, %v1333_v2  ;;  %v1353_v37 = vsel %vm1350_vm8, %v1352_v57, %v1348_v54  ;;  %v2991_v10 = vor.u32 %v3345_v55, %v2990_v59  ;;  %v2979_v21 = vor.u32 %v3342_v3, %v2978_v34 }
 0x67f   :  { %v1359_v38 = vsub.f32 1.0, %v1353_v37  ;;  %v1361_v45 = vmul.f32 %v1353_v37, %v4411_v8  ;;  %v3298_v8 = vld [vmem:[#allocation14] sm:$0xff]  ;;  %v2967_v2 = vor.u32 %v3339_v0, %v2966_v56  ;;  %v3046_v37 = vld [vmem:[#allocation18 + $0x98] sm:$0xf]  ;;  %v1645_v50 = vsel %vm1640_vm10, %v1636_v40, 0 }
 0x680   :  { %v1357_v11 = vadd.f32 %v1356_v48, %v4527_v46  ;;  %1507 = vmatpush.bf16.msrb.mxu1 %v3298_v8  ;;  %v3361_v46 = vld [vmem:[#allocation18 + $0xb8] sm:$0xf0]  ;;  %v3346_v8 = vld [vmem:[#allocation18 + $0x40] sm:$0xf0] }
 0x681   :  { %v3059_v57 = vor.u32 %v3361_v46, %v3058_v52  ;;  %v2999_v18 = vor.u32 %v3346_v8, %v2998_v17  ;;  %v3366_v17 = vld [vmem:[#allocation18 + $0xe0] sm:$0xf0]  ;;  %v3373_v40 = vld [vmem:[#allocation18 + $0x118] sm:$0xf0] }
 0x682   :  { %3514 = vtanh.f32 %v1357_v11 }
 0x688   :  { %v3515_v41 = vpop.eup %3514 }
 0x689   :  { %v1360_v43 = vmul.f32 %v3515_v41, %v1359_v38  ;;  %v3358_v38 = vld [vmem:[#allocation18 + $0xa0] sm:$0xf0]  ;;  %v3034_v41 = vld [vmem:[#allocation18 + $0x80] sm:$0xf] }
 0x68a   :  { %v3047_v39 = vor.u32 %v3358_v38, %v3046_v37  ;;  %v3378_v37 = vld [vmem:[#allocation18 + $0x140] sm:$0xf0] }
 0x68b   :  { %v1362_v49 = vadd.f32 %v1361_v45, %v1360_v43  ;;  %v3355_v43 = vld [vmem:[#allocation18 + $0x88] sm:$0xf0] }
 0x68c   :  { %v3035_v45 = vor.u32 %v3355_v43, %v3034_v41  ;;  %v3375_v41 = vld [vmem:[#allocation18 + $0x128] sm:$0xf0] }
 0x68d   :  { %1364 = vrot.lane.b32.xlu1 %v1362_v49, %s3874_s13  ;;  %v3022_v49 = vld [vmem:[#allocation18 + $0x68] sm:$0xf] }
 0x68e   :  { %v3023_v60 = vor.u32 %v3352_v51, %v3022_v49  ;;  %v3372_v49 = vld [vmem:[#allocation18 + $0x110] sm:$0xf0] }
 0x695   :  { %807 = vrot.lane.b32.xlu1 %v4273_v42, %s3875_s19  ;;  %v3318_v42 = vld [vmem:[#allocation15 + $0x20] sm:$0xff] }
 0x696   :  { %1595 = vmatpush.bf16.msrb.mxu3 %v3318_v42  ;;  %v2987_v42 = vor.u32 %v3343_v31, %v2986_v27  ;;  %v3363_v27 = vld [vmem:[#allocation18 + $0xc8] sm:$0xf0]  ;;  %v3154_v31 = vld [vmem:[#allocation18 + $0x170] sm:$0xf] }
 0x69a   :  { %1596 = vmatpush.bf16.msrb.mxu3 %v3317_v28 }
 0x69e   :  { %1597 = vmatpush.bf16.msrb.mxu3 %v3316_v33 }
 0x6a2   :  { %1598 = vmatpush.bf16.msrb.mxu3 %v3315_v14 }
 0x6a6   :  { %1599 = vmatpush.bf16.msrb.mxu3 %v3314_v5 }
 0x6aa   :  { %2159 = vmatpush.bf16.msra.mxu3 %v3051_v15 }
 0x6ae   :  { %2160 = vmatpush.bf16.msra.mxu3 %v3039_v16 }
 0x6b2   :  { %2161 = vmatpush.bf16.msra.mxu3 %v3027_v62  ;;  %v1633_v62 = vunpack.c.l.b16 %v1631_v19  ;;  %v3376_v19 = vld [vmem:[#allocation18 + $0x130] sm:$0xf0] }
 0x6b4   :  { %v1635_v4 = vpack.c.b16 %v1633_v62, %v1633_v62  ;;  %v3327_v62 = vld [vmem:[#allocation17 + $0x28] sm:$0xff] }
 0x6b6   :  { %2162 = vmatpush.bf16.msra.mxu3 %v3015_v26  ;;  %v1642_v26 = vsel %vm1640_vm10, %v1635_v4, 0  ;;  %v3335_v4 = vld [vmem:[#allocation17 + $0x68] sm:$0xff] }
 0x6b7   :  { %1654 = vmatpush.bf16.msrb.mxu0 %v1642_v26  ;;  %v3106_v26 = vld [vmem:[#allocation18 + $0x110] sm:$0xf] }
 0x6ba   :  { %2163 = vmatpush.bf16.msra.mxu3 %v3003_v12 }
 0x6bb   :  { %1667 = vmatpush.bf16.msra.mxu0 %v1645_v50  ;;  %v3326_v50 = vld [vmem:[#allocation17 + $0x20] sm:$0xff] }
 0x6be   :  { %2164 = vmatpush.bf16.msra.mxu3 %v2991_v10 }
 0x6c2   :  { %2165 = vmatpush.bf16.msra.mxu3 %v2979_v21 }
 0x6c6   :  { %2166 = vmatpush.bf16.msra.mxu3 %v2967_v2 }
 0x6ff   :  { %v1365_v36 = vpop.permute.xlu1 %1364 }
 0x700   :  { %1367 = vst.msk [vmem:[#allocation2 + $0x8] sm:$0xff] %vm998_vm9, %v1365_v36  ;;  %v2974_v36 = vld [vmem:[#allocation18 + $0x8] sm:$0xf] }
 0x707   :  { %v808_v35 = vpop.permute.xlu1 %807  ;;  %v4426_v9 = vld [vmem:[#allocation2 + $0x8] sm:$0xff] }
 0x708   :  { %811 = vst.msk [vmem:[#allocation2] sm:$0xff] %vm810_vm5, %v808_v35  ;;  %v4431_v30 = vpack.c.bf16 %v4426_v9, %v4426_v9  ;;  %vm1605_vm5 = vcmask 64512  }
 0x709   :  { %905 = vst.msk [vmem:[#allocation2] sm:$0xff] %vm904_vm14, %v902_v44  ;;  %v3340_v44 = vld [vmem:[#allocation18 + $0x10] sm:$0xf0] }
 0x70a   :  { %999 = vst.msk [vmem:[#allocation2] sm:$0xff] %vm998_vm9, %v996_v22  ;;  %1521 = vmatmul.bf16.vlgmr.msrb.gmra.mxu2 %v4431_v30  ;;  %v2975_v28 = vor.u32 %v3340_v44, %v2974_v36  ;;  %vm2531_vm9 = vcmask 187392  }
 0x711   :  { %v4436_v1 = vld [vmem:[#allocation2] sm:$0xff] }
 0x712   :  { %v4440_v29 = vpack.c.bf16 %v4436_v1, %v4436_v1 }
 0x714   :  { %1508 = vmatmul.bf16.vlgmr.msrb.gmra.mxu1 %v4440_v29 }
 0x78d   :  { %v1522_v13 = vpop.f32.mrf.mxu2 }
 0x791   :  { %v1509_v23 = vpop.f32.mrf.mxu1 }
 0x792   :  { %v1523_v48 = vadd.f32 %v1522_v13, %v1509_v23  ;;  %v3146_v13 = vld [vmem:[#allocation18 + $0x168] sm:$0xf]  ;;  %v3384_v23 = vld [vmem:[#allocation18 + $0x170] sm:$0xf0] }
 0x793   :  { %v3147_v52 = vor.u32 %v3384_v23, %v3146_v13  ;;  %v3332_v13 = vld [vmem:[#allocation17 + $0x50] sm:$0xff] }
 0x794   :  { %3516 = vtanh.f32 %v1523_v48 }
 0x795   :  { %v1524_v32 = vpop.f32.mrf.mxu2 }
 0x799   :  { %v1511_v11 = vpop.f32.mrf.mxu1 }
 0x79a   :  { %v3517_v54 = vpop.eup %3516  ;;  %v3134_v11 = vld [vmem:[#allocation18 + $0x150] sm:$0xf] }
 0x79b   :  { %v1527_v25 = vpack.c.bf16 %v3517_v54, %v3517_v54  ;;  %v3381_v54 = vld [vmem:[#allocation18 + $0x158] sm:$0xf0] }
 0x79d   :  { %1600 = vmatmul.bf16.vlgmr.msrb.gmra.mxu3 %v1527_v25  ;;  %v3122_v25 = vld [vmem:[#allocation18 + $0x138] sm:$0xf] }
 0x79e   :  { %2211 = vmatpush.bf16.msrb.mxu3 %v3059_v57  ;;  %v3135_v57 = vor.u32 %v3381_v54, %v3134_v11  ;;  %v3123_v38 = vor.u32 %v3378_v37, %v3122_v25  ;;  %v3052_v11 = vld [vmem:[#allocation18 + $0xb4] sm:$0xf0]  ;;  %v3356_v37 = vld [vmem:[#allocation18 + $0x94] sm:$0xf] }
 0x7a2   :  { %2212 = vmatpush.bf16.msrb.mxu3 %v3047_v39  ;;  %v3110_v39 = vld [vmem:[#allocation18 + $0x120] sm:$0xf] }
 0x7a3   :  { %v3111_v43 = vor.u32 %v3375_v41, %v3110_v39  ;;  %v3353_v41 = vld [vmem:[#allocation18 + $0x7c] sm:$0xf] }
 0x7a6   :  { %2213 = vmatpush.bf16.msrb.mxu3 %v3035_v45  ;;  %v3098_v45 = vld [vmem:[#allocation18 + $0x108] sm:$0xf] }
 0x7a7   :  { %v3099_v51 = vor.u32 %v3372_v49, %v3098_v45  ;;  %v3350_v49 = vld [vmem:[#allocation18 + $0x64] sm:$0xf] }
 0x7aa   :  { %2214 = vmatpush.bf16.msrb.mxu3 %v3023_v60  ;;  %v3086_v60 = vld [vmem:[#allocation18 + $0xf0] sm:$0xf] }
 0x7ab   :  { %v3087_v20 = vor.u32 %v3369_v61, %v3086_v60  ;;  %v3347_v61 = vld [vmem:[#allocation18 + $0x4c] sm:$0xf] }
 0x7ad   :  { %2167 = vmatmul.bf16.vlgmr.msra.gmra.mxu3 %v4440_v29 }
 0x7ae   :  { %2215 = vmatpush.bf16.msrb.mxu3 %v3011_v6  ;;  %v3074_v6 = vld [vmem:[#allocation18 + $0xd8] sm:$0xf] }
 0x7af   :  { %v3075_v8 = vor.u32 %v3366_v17, %v3074_v6  ;;  %v3344_v17 = vld [vmem:[#allocation18 + $0x34] sm:$0xf] }
 0x7b2   :  { %2216 = vmatpush.bf16.msrb.mxu3 %v2999_v18  ;;  %v3062_v18 = vld [vmem:[#allocation18 + $0xc0] sm:$0xf] }
 0x7b3   :  { %v3063_v36 = vor.u32 %v3363_v27, %v3062_v18  ;;  %v3331_v27 = vld [vmem:[#allocation17 + $0x48] sm:$0xff] }
 0x7b6   :  { %2217 = vmatpush.bf16.msrb.mxu3 %v2987_v42  ;;  %v3385_v42 = vld [vmem:[#allocation18 + $0x178] sm:$0xf0] }
 0x7b7   :  { %v3155_v44 = vor.u32 %v3385_v42, %v3154_v31  ;;  %v3341_v31 = vld [vmem:[#allocation18 + $0x1c] sm:$0xf]  ;;  %v2980_v42 = vld [vmem:[#allocation18 + $0x24] sm:$0xf0] }
 0x7ba   :  { %2218 = vmatpush.bf16.msrb.mxu3 %v2975_v28  ;;  %v3142_v28 = vld [vmem:[#allocation18 + $0x158] sm:$0xf] }
 0x7bd   :  { %2219 = vmatmul.bf16.vlgmr.msrb.gmra.mxu3 %v4440_v29 }
 0x820   :  { %v1601_v33 = vpop.f32.mrf.mxu3 }
 0x821   :  { %v1606_v35 = vsel %vm1605_vm5, %v1601_v33, -inf }
 0x822   :  { %1607 = vmax.xlane.f32.xlu0 %v1606_v35  ;;  %v3329_v35 = vld [vmem:[#allocation17 + $0x38] sm:$0xff] }
 0x823   :  { %1805 = vmatpush.bf16.msra.mxu1 %v3329_v35 }
 0x828   :  { %v1603_v22 = vpop.f32.mrf.mxu3 }
 0x830   :  { %v4446_v14 = vpop.f32.mrf.mxu3 }
 0x838   :  { %v2170_v24 = vpop.f32.mrf.mxu3 }
 0x839   :  { %v3130_v24 = vld [vmem:[#allocation18 + $0x140] sm:$0xf] }
 0x840   :  { %v4448_v53 = vpop.f32.mrf.mxu3 }
 0x848   :  { %v2222_v5 = vpop.f32.mrf.mxu3 }
 0x849   :  { %v3379_v5 = vld [vmem:[#allocation18 + $0x148] sm:$0xf0] }
 0x895   :  { %v1608_v15 = vpop.xlane.xlu0 %1607 }
 0x896   :  { %v1609_v58 = vsub.f32 %v1601_v33, %v1608_v15  ;;  %v3382_v33 = vld [vmem:[#allocation18 + $0x160] sm:$0xf0]  ;;  %v3328_v15 = vld [vmem:[#allocation17 + $0x30] sm:$0xff] }
 0x897   :  { %v3143_v22 = vor.u32 %v3382_v33, %v3142_v28  ;;  %1806 = vmatpush.bf16.msra.mxu1 %v3328_v15  ;;  %v3383_v28 = vld [vmem:[#allocation18 + $0x16c] sm:$0xf]  ;;  %v3148_v33 = vld [vmem:[#allocation18 + $0x174] sm:$0xf0]  ;;  %v3380_v15 = vld [vmem:[#allocation18 + $0x154] sm:$0xf] }
 0x898   :  { %v1610_v63 = vmul.f32 1.442695, %v1609_v58  ;;  %v3337_v58 = vld [vmem:[#allocation17 + $0x78] sm:$0xff]  ;;  %v3151_v35 = vor.u32 %v3383_v28, %v3148_v33 }
 0x899   :  { %1818 = vmatpush.bf16.msra.mxu2 %v3337_v58  ;;  %v3136_v58 = vld [vmem:[#allocation18 + $0x15c] sm:$0xf0] }
 0x89a   :  { %3518 = vpow2.f32 %v1610_v63  ;;  %v3336_v63 = vld [vmem:[#allocation17 + $0x70] sm:$0xff] }
 0x89b   :  { %1807 = vmatpush.bf16.msra.mxu1 %v3327_v62  ;;  %v3374_v62 = vld [vmem:[#allocation18 + $0x124] sm:$0xf] }
 0x89d   :  { %1819 = vmatpush.bf16.msra.mxu2 %v3336_v63  ;;  %v3139_v63 = vor.u32 %v3380_v15, %v3136_v58  ;;  %v3397_v15 = vld [vmem:[#allocation20 + $0x58] sm:$0xff]  ;;  %v3396_v58 = vld [vmem:[#allocation20 + $0x50] sm:$0xff] }
 0x89f   :  { %1808 = vmatpush.bf16.msra.mxu1 %v3326_v50 }
 0x8a0   :  { %v3519_v16 = vpop.eup %3518 }
 0x8a1   :  { %v1612_v7 = vsel %vm1605_vm5, %v3519_v16, 0.0  ;;  %1820 = vmatpush.bf16.msra.mxu2 %v3335_v4  ;;  %v3112_v4 = vld [vmem:[#allocation18 + $0x12c] sm:$0xf0] }
 0x8a2   :  { %1613 = vadd.xlane.f32.xlu1 %v1612_v7  ;;  %v3118_v7 = vld [vmem:[#allocation18 + $0x128] sm:$0xf] }
 0x8a3   :  { %v3119_v47 = vor.u32 %v3376_v19, %v3118_v7  ;;  %v3124_v7 = vld [vmem:[#allocation18 + $0x144] sm:$0xf0] }
 0x915   :  { %v1614_v12 = vpop.xlane.xlu1 %1613 }
 0x916   :  { %3520 = vrcp.f32 %v1614_v12  ;;  %v1626_v34 = vand.u32 2147483648, %v1614_v12  ;;  %v1624_v21 = vand.u32 2147483647, %v1614_v12  ;;  %vm1620_vm12 = vweird.f32 %v1614_v12 }
 0x918   :  { %v1627_v0 = vor.u32 1.1754944e-38, %v1626_v34  ;;  %vm1625_vm14 = vcmp.eq.f32.partialorder %v1624_v21, 8.507059e+37  ;;  %v3325_v34 = vld [vmem:[#allocation17 + $0x18] sm:$0xff] }
 0x919   :  { %1809 = vmatpush.bf16.msra.mxu1 %v3325_v34  ;;  %v3076_v34 = vld [vmem:[#allocation18 + $0xe4] sm:$0xf0] }
 0x91c   :  { %v3521_v59 = vpop.eup %3520 }
 0x91d   :  { %v1616_v55 = vmul.f32 %v3521_v59, %v1614_v12  ;;  %vm1621_vm11 = vweird.f32 %v3521_v59  ;;  %v3334_v12 = vld [vmem:[#allocation17 + $0x60] sm:$0xff] }
 0x91e   :  { %vm1622_vm13 = vmor %vm1620_vm12, %vm1621_vm11  ;;  %1821 = vmatpush.bf16.msra.mxu2 %v3334_v12  ;;  %v3368_v12 = vld [vmem:[#allocation18 + $0xf4] sm:$0xf] }
 0x91f   :  { %v1617_v10 = vsub.f32 1.0, %v1616_v55  ;;  %v3094_v55 = vld [vmem:[#allocation18 + $0xf8] sm:$0xf] }
 0x921   :  { %v1618_v3 = vmul.f32 %v3521_v59, %v1617_v10  ;;  %v3370_v10 = vld [vmem:[#allocation18 + $0x100] sm:$0xf0] }
 0x922   :  { %v3095_v21 = vor.u32 %v3370_v10, %v3094_v55  ;;  %v3365_v10 = vld [vmem:[#allocation18 + $0xdc] sm:$0xf] }
 0x923   :  { %v1619_v56 = vadd.f32 %v3521_v59, %v1618_v3  ;;  %v3333_v3 = vld [vmem:[#allocation17 + $0x58] sm:$0xff] }
 0x924   :  { %1822 = vmatpush.bf16.msra.mxu2 %v3333_v3  ;;  %v3079_v3 = vor.u32 %v3365_v10, %v3076_v34 }
 0x925   :  { %v1623_v2 = vsel %vm1622_vm13, %v3521_v59, %v1619_v56  ;;  %v3107_v59 = vor.u32 %v3373_v40, %v3106_v26  ;;  %v3082_v56 = vld [vmem:[#allocation18 + $0xe0] sm:$0xf]  ;;  %v3371_v26 = vld [vmem:[#allocation18 + $0x10c] sm:$0xf]  ;;  %v3100_v40 = vld [vmem:[#allocation18 + $0x114] sm:$0xf0] }
 0x926   :  { %v1628_v48 = vsel %vm1625_vm14, %v1627_v0, %v1623_v2  ;;  %v3367_v0 = vld [vmem:[#allocation18 + $0xe8] sm:$0xf0]  ;;  %v3324_v2 = vld [vmem:[#allocation17 + $0x10] sm:$0xff]  ;;  %v3103_v50 = vor.u32 %v3371_v26, %v3100_v40 }
 0x927   :  { %v1629_v32 = vmul.f32 %v3519_v16, %v1628_v48  ;;  %v3131_v16 = vor.u32 %v3379_v5, %v3130_v24  ;;  %v3083_v23 = vor.u32 %v3367_v0, %v3082_v56  ;;  %v3070_v48 = vld [vmem:[#allocation18 + $0xc8] sm:$0xf]  ;;  %1810 = vmatpush.bf16.msra.mxu1 %v3324_v2  ;;  %v2968_v24 = vld [vmem:[#allocation18 + $0xc] sm:$0xf0]  ;;  %v3362_v56 = vld [vmem:[#allocation18 + $0xc4] sm:$0xf] }
 0x928   :  { %1823 = vmatpush.bf16.msra.mxu2 %v3332_v13  ;;  %v3064_v0 = vld [vmem:[#allocation18 + $0xcc] sm:$0xf0] }
 0x929   :  { %v1630_v46 = vpack.c.bf16 %v1629_v32, %v1629_v32  ;;  %v3364_v32 = vld [vmem:[#allocation18 + $0xd0] sm:$0xf0]  ;;  %v3067_v13 = vor.u32 %v3362_v56, %v3064_v0 }
 0x92a   :  { %v3071_v54 = vor.u32 %v3364_v32, %v3070_v48  ;;  %v3392_v32 = vld [vmem:[#allocation20 + $0x30] sm:$0xff] }
 0x92b   :  { %2898 = vmatmul.msk.bf16.vlgmr.msrb.gmra.mxu0 %vm1605_vm5, %v1630_v46 }
 0x92c   :  { %2172 = vmatpush.bf16.msrb.mxu0 %v3147_v52  ;;  %v3323_v52 = vld [vmem:[#allocation17 + $0x8] sm:$0xff]  ;;  %1824 = vmatpush.bf16.msra.mxu2 %v3331_v27 }
 0x92d   :  { %1811 = vmatpush.bf16.msra.mxu1 %v3323_v52  ;;  %v3408_v52 = vld [vmem:[#allocation20 + $0xb0] sm:$0xff] }
 0x92e   :  { %2458 = vmatpush.bf16.msra.mxu3 %v3408_v52 }
 0x930   :  { %2173 = vmatpush.bf16.msrb.mxu0 %v3135_v57  ;;  %v3322_v57 = vld [vmem:[#allocation17] sm:$0xff] }
 0x931   :  { %1812 = vmatpush.bf16.msra.mxu1 %v3322_v57  ;;  %v3406_v57 = vld [vmem:[#allocation20 + $0xa0] sm:$0xff] }
 0x934   :  { %2174 = vmatpush.bf16.msrb.mxu0 %v3123_v38  ;;  %v3040_v38 = vld [vmem:[#allocation18 + $0x9c] sm:$0xf0] }
 0x935   :  { %v3043_v39 = vor.u32 %v3356_v37, %v3040_v38  ;;  %v3389_v38 = vld [vmem:[#allocation20 + $0x18] sm:$0xff] }
 0x938   :  { %2175 = vmatpush.bf16.msrb.mxu0 %v3111_v43  ;;  %v3028_v43 = vld [vmem:[#allocation18 + $0x84] sm:$0xf0] }
 0x939   :  { %v3031_v45 = vor.u32 %v3353_v41, %v3028_v43  ;;  %v3388_v43 = vld [vmem:[#allocation20 + $0x10] sm:$0xff] }
 0x93b   :  { %2899 = vmatmul.msk.bf16.vlgmr.msra.gmra.mxu0 %vm1605_vm5, %v1630_v46  ;;  %v3359_v46 = vld [vmem:[#allocation18 + $0xac] sm:$0xf]  ;;  %vm2605_vm5 = vcmask 1047808  }
 0x93c   :  { %2176 = vmatpush.bf16.msrb.mxu0 %v3099_v51  ;;  %v3055_v25 = vor.u32 %v3359_v46, %v3052_v11  ;;  %v3016_v51 = vld [vmem:[#allocation18 + $0x6c] sm:$0xf0]  ;;  %v3407_v11 = vld [vmem:[#allocation20 + $0xa8] sm:$0xff] }
 0x93d   :  { %v3019_v60 = vor.u32 %v3350_v49, %v3016_v51  ;;  %2459 = vmatpush.bf16.msra.mxu3 %v3407_v11  ;;  %v1895_v49 = vld [vmem:[%s4510_s11] sm:$0x7]  ;;  %s3877_s11 = smov [#allocation23]  }
 0x93e   :  { %2185 = vmatpush.bf16.msrb.mxu1 %v3055_v25  ;;  %v3390_v25 = vld [vmem:[#allocation20 + $0x20] sm:$0xff]  ;;  %v1898_v40 = vperm.slane %v1895_v49, 1  ;;  %v2506_v11 = vld [vmem:[#allocation21 + $0x20] sm:$0xf]  ;;  %s2616_s21 = sshll.u32 %s3877_s11, 4  ;;  %s2617_s21 = int_to_ptr.vmem [resolvable:$true] %s2616_s21 }
 0x940   :  { %2177 = vmatpush.bf16.msrb.mxu0 %v3087_v20  ;;  %v3004_v20 = vld [vmem:[#allocation18 + $0x54] sm:$0xf0] }
 0x941   :  { %v3007_v6 = vor.u32 %v3347_v61, %v3004_v20  ;;  %2460 = vmatpush.bf16.msra.mxu3 %v3406_v57  ;;  %v3403_v61 = vld [vmem:[#allocation20 + $0x88] sm:$0xff]  ;;  %v3386_v20 = vld [vmem:[#allocation20] sm:$0xff] }
 0x942   :  { %2186 = vmatpush.bf16.msrb.mxu1 %v3043_v39  ;;  %v3405_v39 = vld [vmem:[#allocation20 + $0x98] sm:$0xff] }
 0x944   :  { %2178 = vmatpush.bf16.msrb.mxu0 %v3075_v8  ;;  %v2992_v8 = vld [vmem:[#allocation18 + $0x3c] sm:$0xf0] }
 0x945   :  { %v2995_v18 = vor.u32 %v3344_v17, %v2992_v8  ;;  %2461 = vmatpush.bf16.msra.mxu3 %v3405_v39 }
 0x946   :  { %2187 = vmatpush.bf16.msrb.mxu1 %v3031_v45  ;;  %v3404_v45 = vld [vmem:[#allocation20 + $0x90] sm:$0xff] }
 0x948   :  { %2179 = vmatpush.bf16.msrb.mxu0 %v3063_v36  ;;  %v2983_v36 = vor.u32 %v3341_v31, %v2980_v42  ;;  %v1899_v42 = vperm.slane %v1895_v49, 2 }
 0x949   :  { %2462 = vmatpush.bf16.msra.mxu3 %v3404_v45 }
 0x94a   :  { %2188 = vmatpush.bf16.msrb.mxu1 %v3019_v60  ;;  %v3387_v60 = vld [vmem:[#allocation20 + $0x8] sm:$0xff] }
 0x94b   :  { %2180 = vmatmul.bf16.vlgmr.msrb.gmra.mxu0 %v4431_v30 }
 0x94c   :  { %2224 = vmatpush.bf16.msra.mxu0 %v3155_v44  ;;  %v3330_v44 = vld [vmem:[#allocation17 + $0x40] sm:$0xff] }
 0x94d   :  { %1825 = vmatpush.bf16.msra.mxu2 %v3330_v44  ;;  %2463 = vmatpush.bf16.msra.mxu3 %v3403_v61  ;;  %v3411_v61 = vld [vmem:[#allocation21 + $0x10] sm:$0xf0] }
 0x94e   :  { %2189 = vmatpush.bf16.msrb.mxu1 %v3007_v6 }
 0x950   :  { %2225 = vmatpush.bf16.msra.mxu0 %v3143_v22  ;;  %v3338_v22 = vld [vmem:[#allocation18 + $0x4] sm:$0xf] }
 0x951   :  { %v2971_v5 = vor.u32 %v3338_v22, %v2968_v24  ;;  %2198 = vmatpush.bf16.msrb.mxu2 %v3151_v35  ;;  %v3401_v22 = vld [vmem:[#allocation20 + $0x78] sm:$0xff]  ;;  %v3400_v24 = vld [vmem:[#allocation20 + $0x70] sm:$0xff] }
 0x952   :  { %2190 = vmatpush.bf16.msrb.mxu1 %v2995_v18 }
 0x954   :  { %2226 = vmatpush.bf16.msra.mxu0 %v3131_v16  ;;  %v3377_v16 = vld [vmem:[#allocation18 + $0x13c] sm:$0xf] }
 0x955   :  { %2199 = vmatpush.bf16.msrb.mxu2 %v3139_v63  ;;  %v3127_v19 = vor.u32 %v3377_v16, %v3124_v7  ;;  %v3395_v63 = vld [vmem:[#allocation20 + $0x48] sm:$0xff]  ;;  %v3394_v7 = vld [vmem:[#allocation20 + $0x40] sm:$0xff] }
 0x956   :  { %2191 = vmatpush.bf16.msrb.mxu1 %v2983_v36  ;;  %v2221_v36 = vadd.f32 %v4448_v53, %v1899_v42  ;;  %v3409_v42 = vld [vmem:[#allocation21 + $0x4] sm:$0xf] }
 0x958   :  { %2227 = vmatpush.bf16.msra.mxu0 %v3119_v47  ;;  %v3115_v47 = vor.u32 %v3374_v62, %v3112_v4 }
 0x959   :  { %2200 = vmatpush.bf16.msrb.mxu2 %v3127_v19 }
 0x95a   :  { %2192 = vmatpush.bf16.msrb.mxu1 %v2971_v5  ;;  %v3398_v5 = vld [vmem:[#allocation20 + $0x60] sm:$0xff] }
 0x95c   :  { %2228 = vmatpush.bf16.msra.mxu0 %v3107_v59  ;;  %v3088_v59 = vld [vmem:[#allocation18 + $0xfc] sm:$0xf0] }
 0x95d   :  { %2201 = vmatpush.bf16.msrb.mxu2 %v3115_v47  ;;  %v3091_v55 = vor.u32 %v3368_v12, %v3088_v59 }
 0x960   :  { %2229 = vmatpush.bf16.msra.mxu0 %v3095_v21 }
 0x961   :  { %2202 = vmatpush.bf16.msrb.mxu2 %v3103_v50 }
 0x964   :  { %2230 = vmatpush.bf16.msra.mxu0 %v3083_v23  ;;  %v3393_v23 = vld [vmem:[#allocation20 + $0x38] sm:$0xff] }
 0x965   :  { %2203 = vmatpush.bf16.msrb.mxu2 %v3091_v55 }
 0x968   :  { %2231 = vmatpush.bf16.msra.mxu0 %v3071_v54  ;;  %v3391_v54 = vld [vmem:[#allocation20 + $0x28] sm:$0xff] }
 0x969   :  { %2204 = vmatpush.bf16.msrb.mxu2 %v3079_v3 }
 0x96b   :  { %2232 = vmatmul.bf16.vlgmr.msra.gmra.mxu0 %v4431_v30 }
 0x96d   :  { %2205 = vmatpush.bf16.msrb.mxu2 %v3067_v13 }
 0x9a8   :  { %v1656_v21 = vpop.f32.mrf.mxu0 }
 0x9a9   :  { %v1673_v2 = vmul.f32 %v1656_v21, %v4436_v1 }
 0x9ab   :  { %v1675_v48 = vpack.c.bf16 %v1673_v2, %v1673_v2 }
 0x9ad   :  { %1813 = vmatmul.bf16.vlgmr.msra.gmra.mxu1 %v1675_v48 }
 0x9ae   :  { %2431 = vmatpush.bf16.msra.mxu1 %v3393_v23 }
 0x9b0   :  { %v1658_v46 = vpop.f32.mrf.mxu0 }
 0x9b1   :  { %v2505_v46 = vld [vmem:[#allocation21 + $0x18] sm:$0xff] }
 0x9b2   :  { %2432 = vmatpush.bf16.msra.mxu1 %v3392_v32  ;;  %v3876_v32 = vmov 65535   ;;  %v2519_v57 = vunpack.c.l.b16 %v2505_v46 }
 0x9b3   :  { %v2536_v52 = vsel %vm2535_vm0, 4294967295, %v3876_v32 }
 0x9b6   :  { %2433 = vmatpush.bf16.msra.mxu1 %v3391_v54 }
 0x9b8   :  { %v1669_v37 = vpop.f32.mrf.mxu0 }
 0x9b9   :  { %v1674_v1 = vmul.f32 %v1669_v37, %v4426_v9  ;;  %v1897_v9 = vperm.slane %v1895_v49, 0  ;;  %v2537_v37 = vsel %vm1640_vm10, %v2536_v52, 0  ;;  %v3251_v49 = vld [vmem:[#allocation21] sm:$0xf]  ;;  %vm2609_vm10 = vcmask 130048  }
 0x9ba   :  { %2434 = vmatpush.bf16.msra.mxu1 %v3390_v25  ;;  %v2521_v25 = vunpack.c.l.b16 %v2506_v11 }
 0x9bb   :  { %v1676_v41 = vpack.c.bf16 %v1674_v1, %v1674_v1  ;;  %v2169_v6 = vadd.f32 %v4446_v14, %v1897_v9  ;;  %v2525_v1 = vpack.c.b16 %v2519_v57, %v2519_v57 }
 0x9bd   :  { %1826 = vmatmul.bf16.vlgmr.msra.gmra.mxu2 %v1676_v41  ;;  %2193 = vmatmul.bf16.vlgmr.msrb.gmra.mxu1 %v4440_v29  ;;  %v3402_v29 = vld [vmem:[#allocation20 + $0x80] sm:$0xff]  ;;  %v2539_v39 = vand.u32 %v2537_v37, %v2525_v1 }
 0x9be   :  { %2435 = vmatpush.bf16.msra.mxu1 %v3389_v38  ;;  %2464 = vmatpush.bf16.msra.mxu3 %v3402_v29  ;;  %v2527_v38 = vpack.c.b16 %v2521_v25, %v2521_v25 }
 0x9bf   :  { %2444 = vmatpush.bf16.msra.mxu2 %v3401_v22  ;;  %2553 = vmatpush.bf16.msrb.mxu0 %v2539_v39 }
 0x9c0   :  { %v1671_v51 = vpop.f32.mrf.mxu0  ;;  %v2545_v41 = vand.u32 %v2537_v37, %v2527_v38 }
 0x9c1   :  { %v3410_v51 = vld [vmem:[#allocation21 + $0x8] sm:$0xf0] }
 0x9c2   :  { %2436 = vmatpush.bf16.msra.mxu1 %v3388_v43  ;;  %2579 = vmatpush.bf16.msrb.mxu3 %v2545_v41  ;;  %v3252_v9 = vor.u32 %v3410_v51, %v3251_v49 }
 0x9c3   :  { %2445 = vmatpush.bf16.msra.mxu2 %v3400_v24 }
 0x9c4   :  { %2554 = vmatpush.bf16.msrb.mxu0 %v3252_v9 }
 0x9c6   :  { %2437 = vmatpush.bf16.msra.mxu1 %v3387_v60  ;;  %v3259_v60 = vld [vmem:[#allocation21 + $0x8] sm:$0xf] }
 0x9c8   :  { %v2181_v17 = vpop.f32.mrf.mxu0 }
 0x9c9   :  { %v4467_v8 = vadd.f32 %v2181_v17, %v2169_v6  ;;  %v3260_v6 = vor.u32 %v3411_v61, %v3259_v60  ;;  %v2520_v17 = vunpack.c.h.b16 %v2505_v46 }
 0x9ca   :  { %2438 = vmatpush.bf16.msra.mxu1 %v3386_v20 }
 0x9cb   :  { %v2237_v18 = vmul.f32 %v4467_v8, %v4467_v8  ;;  %2580 = vmatpush.bf16.msrb.mxu3 %v3260_v6 }
 0x9cd   :  { %v2240_v27 = vpack.c.bf16 %v2237_v18, %v2237_v18  ;;  %2206 = vmatmul.bf16.vlgmr.msrb.gmra.mxu2 %v4431_v30  ;;  %v3399_v30 = vld [vmem:[#allocation20 + $0x68] sm:$0xff] }
 0x9ce   :  { %2446 = vmatpush.bf16.msra.mxu2 %v3399_v30 }
 0x9cf   :  { %2439 = vmatmul.bf16.vlgmr.msra.gmra.mxu1 %v2240_v27  ;;  %v2526_v27 = vpack.c.b16 %v2520_v17, %v2520_v17 }
 0x9d0   :  { %v2183_v31 = vpop.f32.mrf.mxu0 }
 0x9d2   :  { %2447 = vmatpush.bf16.msra.mxu2 %v3398_v5 }
 0x9d6   :  { %2448 = vmatpush.bf16.msra.mxu2 %v3397_v15 }
 0x9da   :  { %2449 = vmatpush.bf16.msra.mxu2 %v3396_v58 }
 0x9de   :  { %2450 = vmatpush.bf16.msra.mxu2 %v3395_v63 }
 0x9e2   :  { %2451 = vmatpush.bf16.msra.mxu2 %v3394_v7 }
 0x9e8   :  { %v2233_v44 = vpop.f32.mrf.mxu0 }
 0x9e9   :  { %v4473_v28 = vadd.f32 %v2233_v44, %v2221_v36  ;;  %v3253_v36 = vld [vmem:[#allocation21 + $0xc] sm:$0xf0]  ;;  %v2542_v44 = vand.u32 %v2537_v37, %v2526_v27 }
 0x9eb   :  { %v2239_v14 = vmul.f32 %v4473_v28, %v4473_v28  ;;  %2566 = vmatpush.bf16.msra.mxu0 %v2542_v44 }
 0x9ed   :  { %v2242_v33 = vpack.c.bf16 %v2239_v14, %v2239_v14 }
 0x9ef   :  { %3248 = vmatmul.msk.bf16.vlgmr.msra.gmra.mxu3 %vm2427_vm15, %v2242_v33 }
 0x9f0   :  { %v2235_v35 = vpop.f32.mrf.mxu0 }
 0x9f1   :  { %v3256_v35 = vor.u32 %v3409_v42, %v3253_v36 }
 0x9f3   :  { %2567 = vmatpush.bf16.msra.mxu0 %v3256_v35 }
 0xa2a   :  { %v1814_v53 = vpop.f32.mrf.mxu1 }
 0xa32   :  { %v1816_v16 = vpop.f32.mrf.mxu1 }
 0xa3a   :  { %v2194_v19 = vpop.f32.mrf.mxu1 }
 0xa3b   :  { %v2195_v12 = vadd.f32 %v2194_v19, %v1898_v40 }
 0xa40   :  { %v1827_v62 = vpop.f32.mrf.mxu2 }
 0xa41   :  { %v1828_v4 = vadd.f32 %v1827_v62, %v1814_v53 }
 0xa42   :  { %v2196_v47 = vpop.f32.mrf.mxu1 }
 0xa43   :  { %2589 = vst.msk [vmem:[#allocation23] sm:$0xff] %vm366_vm1, %v1828_v4 }
 0xa48   :  { %v1829_v26 = vpop.f32.mrf.mxu2 }
 0xa4c   :  { %v2440_v50 = vpop.f32.mrf.mxu1 }
 0xa50   :  { %v2207_v59 = vpop.f32.mrf.mxu2 }
 0xa51   :  { %v4478_v55 = vadd.f32 %v2207_v59, %v2195_v12 }
 0xa53   :  { %v2238_v10 = vmul.f32 %v4478_v55, %v4478_v55 }
 0xa54   :  { %v2442_v34 = vpop.f32.mrf.mxu1 }
 0xa55   :  { %v2241_v3 = vpack.c.bf16 %v2238_v10, %v2238_v10 }
 0xa57   :  { %2452 = vmatmul.bf16.vlgmr.msra.gmra.mxu2 %v2241_v3 }
 0xa58   :  { %v2209_v21 = vpop.f32.mrf.mxu2 }
 0xa72   :  { %v2466_v56 = vpop.f32.mrf.mxu3 }
 0xa7a   :  { %v2468_v0 = vpop.f32.mrf.mxu3 }
 0xada   :  { %v2453_v2 = vpop.f32.mrf.mxu2 }
 0xadb   :  { %v2454_v13 = vadd.f32 %v2453_v2, %v2440_v50 }
 0xadd   :  { %v4482_v23 = vadd.f32 %v2466_v56, %v2454_v13 }
 0xadf   :  { %v2471_v48 = vadd.f32 1e-08, %v4482_v23  ;;  %v2470_v22 = vadd.f32 1.0, %v4482_v23 }
 0xae1   :  { %3522 = vrsqrt.f32 %v2471_v48  ;;  %vm2479_vm2 = vcmp.eq.f32.partialorder %v2471_v48, inf  ;;  %v2482_v33 = vand.u32 2147483648, %v2471_v48  ;;  %vm2481_vm3 = vcmp.eq.f32.partialorder %v2471_v48, 0.0 }
 0xae2   :  { %v2455_v54 = vpop.f32.mrf.mxu2 }
 0xae7   :  { %v3523_v43 = vpop.eup %3522 }
 0xae8   :  { %v2473_v45 = vmul.f32 %v3523_v43, %v2471_v48 }
 0xaea   :  { %v2474_v20 = vmul.f32 %v3523_v43, %v2473_v45 }
 0xaec   :  { %v2475_v29 = vmul.f32 0.5, %v2474_v20 }
 0xaee   :  { %v2476_v18 = vsub.f32 1.5, %v2475_v29 }
 0xaf0   :  { %v2477_v31 = vmul.f32 %v3523_v43, %v2476_v18 }
 0xaf2   :  { %v2478_v14 = vmul.f32 %v2477_v31, %v2471_v48 }
 0xaf4   :  { %v2480_v24 = vsel %vm2479_vm2, %v2471_v48, %v2478_v14 }
 0xaf5   :  { %v2483_v30 = vsel %vm2481_vm3, %v2482_v33, %v2480_v24 }
 0xaf6   :  { %v2484_v5 = vmul.f32 %v2483_v30, %v2470_v22 }
 0xaf8   :  { %3524 = vrcp.f32 %v2484_v5  ;;  %v2496_v63 = vand.u32 2147483648, %v2484_v5  ;;  %v2494_v7 = vand.u32 2147483647, %v2484_v5  ;;  %vm2490_vm6 = vweird.f32 %v2484_v5 }
 0xafa   :  { %v2497_v62 = vor.u32 1.1754944e-38, %v2496_v63  ;;  %vm2495_vm8 = vcmp.eq.f32.partialorder %v2494_v7, 8.507059e+37 }
 0xafe   :  { %v3525_v15 = vpop.eup %3524 }
 0xaff   :  { %v2486_v53 = vmul.f32 %v3525_v15, %v2484_v5  ;;  %vm2491_vm4 = vweird.f32 %v3525_v15 }
 0xb00   :  { %vm2492_vm7 = vmor %vm2490_vm6, %vm2491_vm4 }
 0xb01   :  { %v2487_v58 = vsub.f32 1.0, %v2486_v53 }
 0xb03   :  { %v2488_v16 = vmul.f32 %v3525_v15, %v2487_v58 }
 0xb05   :  { %v2489_v19 = vadd.f32 %v3525_v15, %v2488_v16 }
 0xb07   :  { %v2493_v4 = vsel %vm2492_vm7, %v3525_v15, %v2489_v19 }
 0xb08   :  { %v2498_v47 = vsel %vm2495_vm8, %v2497_v62, %v2493_v4 }
 0xb09   :  { %v2499_v26 = vmul.f32 %v2498_v47, %v4482_v23 }
 0xb0b   :  { %v2500_v40 = vpack.c.bf16 %v2499_v26, %v2499_v26 }
 0xb0d   :  { %3261 = vmatmul.msk.bf16.vlgmr.msrb.gmra.mxu0 %vm2531_vm9, %v2500_v40  ;;  %3263 = vmatmul.msk.bf16.vlgmr.msrb.gmra.mxu3 %vm2531_vm9, %v2500_v40 }
 0xb1d   :  { %3262 = vmatmul.msk.bf16.vlgmr.msra.gmra.mxu0 %vm2531_vm9, %v2500_v40 }
 0xb8a   :  { %v2556_v50 = vpop.f32.mrf.mxu0 }
 0xb8b   :  { %v2586_v12 = vmul.f32 %v2556_v50, %v4467_v8 }
 0xb8d   :  { %2593 = vrot.lane.b32.xlu2 %v2586_v12, %s3875_s19 }
 0xb90   :  { %v2582_v59 = vpop.f32.mrf.mxu3 }
 0xb91   :  { %v2588_v0 = vmul.f32 %v2582_v59, %v4473_v28 }
 0xb92   :  { %v2558_v10 = vpop.f32.mrf.mxu0 }
 0xb98   :  { %v2584_v34 = vpop.f32.mrf.mxu3 }
 0xb9a   :  { %v2569_v3 = vpop.f32.mrf.mxu0 }
 0xb9b   :  { %v2587_v21 = vmul.f32 %v2569_v3, %v4478_v55 }
 0xb9d   :  { %2595 = vrot.lane.b32.xlu2 %v2587_v21, %s3875_s19 }
 0xba2   :  { %v2571_v56 = vpop.f32.mrf.mxu0 }
 0xba5   :  { %2597 = vrot.lane.b32.xlu2 %v2588_v0, %s3875_s19 }
 0xbe7   :  { %v2594_v2 = vpop.permute.xlu2 %2593 }
 0xbe8   :  { %2606 = vst.msk [vmem:[#allocation23] sm:$0xff] %vm2605_vm5, %v2594_v2 }
 0xbf7   :  { %v2596_v13 = vpop.permute.xlu2 %2595 }
 0xbf8   :  { %v2599_v8 = vsel %vm366_vm1, %v2594_v2, %v2596_v13 }
 0xbf9   :  { %2607 = vst [vmem:[#allocation23 + $0x8] sm:$0xff] %v2599_v8 }
 0xbff   :  { %v2598_v55 = vpop.permute.xlu2 %2597 }
 0xc00   :  { %v2600_v28 = vsel %vm366_vm1, %v2596_v13, %v2598_v55  ;;  %2610 = vst.msk [vmem:[#allocation23 + $0x18] sm:$0xff] %vm2609_vm10, %v2598_v55 }
 0xc01   :  { %2608 = vst [vmem:[#allocation23 + $0x10] sm:$0xff] %v2600_v28 }
 0xc02   :  { %2621 = dma.vmem_to_hbm [thread:$0]  %s2617_s21, 512, %s2619_s24, [#allocation5]  }
 0xc03   :  { %3853 = dma.done.wait [#allocation5], 512  }
 0xc04   :  { %3854 = vsyncadd [#allocation5], 4294966784 }
 0xc05   :  { %2626 = vsyncpa [#allocation4], 1 }
 0xc06   :  { %2627 = vsyncpa [#allocation7], 1 }
 0xc07   :  { %2628 = vsyncpa [#allocation10], 1 }
 0xc08   :  { %2629 = vsyncpa [#allocation13], 1 }
 0xc09   :  { %2630 = vsyncpa [#allocation16], 1 }
 0xc0a   :  { %2631 = vsyncpa [#allocation19], 1 }
 0xc0b   :  { %2632 = vsyncpa [#allocation22], 1 }
 0xc0c   :  { %2633 = vsyncpa [#allocation5], 1 }

</bundles_post_ra>
